<compile_context>
chip_gen: v7x
topology: tpu7x:2x2x1
jax: 0.10.0
libtpu: 0.0.40
codegen_flags: <defaults>
</compile_context>

<pallas_src>
import functools

import jax
import jax.numpy as jnp
import numpy as np
from jax.experimental import pallas as pl
from jax.experimental.pallas import tpu as pltpu


@functools.lru_cache(maxsize=None)
def _vmem_limit_bytes():
    cap = 64 * 1024 * 1024
    try:
        cap = int(pltpu.get_tpu_info().vmem_capacity_bytes)
    except Exception:
        pass
    # ~96 MiB on 128 MiB parts (v5e/v6e), ~48 MiB on 64 MiB parts (v7x).
    return int(min(cap * 3 // 4, 100 * 1024 * 1024))


# --------------------------------------------------------------------------
# Kernel 1: QKV proj + multi-head self-attention + out_proj + gate1 epilogue
# (one batch element per grid step; weights stay resident, single-buffered)
# --------------------------------------------------------------------------
def _attn_gate1_kernel(x_ref, wq_ref, bq_ref, wk_ref, bk_ref, wv_ref, bv_ref,
                       wo3_ref, bo_ref, wx_ref, bx_ref, wy_ref, by_ref,
                       wh_ref, bh_ref, gb_ref, o_ref, *, n_head, scale):
    # TODO(synk): add flash-style query/KV tiling for very long S on v7x
    # (full (H, S, S) f32 scores are materialized here).
    x = x_ref[:, 0, 0, :]                                  # (S, D) f32
    xb = x.astype(jnp.bfloat16)
    seq, d_model = x.shape
    hd = d_model // n_head

    # QKV: bf16 operands, f32 accumulate, cast straight back to bf16 (no f32
    # q/k/v kept alive).  Softmax scale folded into q (S*hd elems, not S*S).
    qb = ((jnp.dot(xb, wq_ref[...], preferred_element_type=jnp.float32)
           + bq_ref[...]) * scale).astype(jnp.bfloat16)
    kb = (jnp.dot(xb, wk_ref[...], preferred_element_type=jnp.float32)
          + bk_ref[...]).astype(jnp.bfloat16)
    vb = (jnp.dot(xb, wv_ref[...], preferred_element_type=jnp.float32)
          + bv_ref[...]).astype(jnp.bfloat16)

    q3 = qb.reshape(seq, n_head, hd)
    k3 = kb.reshape(seq, n_head, hd)
    v3 = vb.reshape(seq, n_head, hd)

    # All heads in one batched matmul: scores (H, Sq, Sk).
    s = jnp.einsum("qhd,khd->hqk", q3, k3,
                   preferred_element_type=jnp.float32)
    m = jnp.max(s, axis=-1, keepdims=True)
    e = jnp.exp(s - m)
    l = jnp.sum(e, axis=-1, keepdims=True)
    p = (e * pl.reciprocal(l, approx=True)).astype(jnp.bfloat16)

    # P @ V batched over heads: (H, Sq, hd).
    oh = jnp.einsum("hqk,khd->hqd", p, v3,
                    preferred_element_type=jnp.float32)

    # out_proj folded per head (wo3 = (H, hd, D)), summed over heads:
    # equivalent to concat(heads) @ wo, without the lane-relayout concat.
    attn = jnp.einsum("hqd,hdm->hqm", oh.astype(jnp.bfloat16), wo3_ref[...],
                      preferred_element_type=jnp.float32)
    attn = jnp.sum(attn, axis=0) + bo_ref[...]             # (S, D) f32

    # gate1 epilogue (fused: no HBM round trip for the attention output).
    yb = attn.astype(jnp.bfloat16)
    comb = (jnp.dot(xb, wx_ref[...], preferred_element_type=jnp.float32) + bx_ref[...]
            + jnp.dot(yb, wy_ref[...], preferred_element_type=jnp.float32) + by_ref[...])
    r = jax.nn.sigmoid(comb)
    z = jax.nn.sigmoid(comb - gb_ref[...])
    h = jnp.tanh(jnp.dot((r * x + attn).astype(jnp.bfloat16), wh_ref[...],
                         preferred_element_type=jnp.float32) + bh_ref[...])
    o_ref[:, 0, 0, :] = ((1.0 - z) * x + z * h).astype(o_ref.dtype)


def attention_gate1(hidden, p, n_head):
    S, B, D = hidden.shape
    assert D % n_head == 0, "d_model must be divisible by n_head"
    hd = D // n_head
    scale = 1.0 / float(np.sqrt(hd))
    g1p = p["gate1"]
    wo3 = p["wo"].reshape(n_head, hd, D)          # per-head out_proj slabs
    h4 = hidden.reshape(S, B, 1, D)               # free view: batch axis kept
                                                  # out of the (8,128) tile dims

    def res(shape):                               # resident, single-buffered
        zeros = (0,) * len(shape)
        return pl.BlockSpec(shape, lambda b, _z=zeros: _z,
                            pipeline_mode=pl.Buffered(1))

    flops = B * (14 * S * D * D + 4 * S * S * D)
    trans = B * (n_head * S * S + 3 * S * D)
    bytes_acc = 8 * B * S * D + 14 * D * D + 32 * D

    out = pl.pallas_call(
        functools.partial(_attn_gate1_kernel, n_head=n_head, scale=scale),
        out_shape=jax.ShapeDtypeStruct((S, B, 1, D), jnp.float32),
        grid=(B,),
        in_specs=[
            pl.BlockSpec((S, 1, 1, D), lambda b: (0, b, 0, 0)),  # hidden slice
            res((D, D)), res((1, D)),                            # wq, bq
            res((D, D)), res((1, D)),                            # wk, bk
            res((D, D)), res((1, D)),                            # wv, bv
            res((n_head, hd, D)), res((1, D)),                   # wo (per head), bo
            res((D, D)), res((1, D)),                            # gate1 wx, bx
            res((D, D)), res((1, D)),                            # gate1 wy, by
            res((D, D)), res((1, D)),                            # gate1 wh, bh
            res((1, D)),                                         # gate1 bias
        ],
        out_specs=pl.BlockSpec((S, 1, 1, D), lambda b: (0, b, 0, 0)),
        compiler_params=pltpu.CompilerParams(
            dimension_semantics=("parallel",),
            vmem_limit_bytes=_vmem_limit_bytes()),
        cost_estimate=pl.CostEstimate(flops=int(flops),
                                      transcendentals=int(trans),
                                      bytes_accessed=int(bytes_acc)),
    )(h4, p["wq"], p["bq"], p["wk"], p["bk"], p["wv"], p["bv"],
      wo3, p["bo"], g1p["wx"], g1p["bx"], g1p["wy"], g1p["by"],
      g1p["wh"], g1p["bh"], g1p["gbias"])
    return out                                    # (S, B, 1, D)


# --------------------------------------------------------------------------
# Kernel 2: feed-forward (w1 -> relu -> w2, d_ff reduction) + gate2 epilogue
# grid = (row tiles [parallel], d_ff tiles [arbitrary reduction, last])
# --------------------------------------------------------------------------
def _ff_gate2_kernel(x_ref, w1_ref, b1_ref, w2_ref, b2_ref,
                     wx_ref, bx_ref, wy_ref, by_ref, wh_ref, bh_ref, gb_ref,
                     o_ref, acc_ref):
    k = pl.program_id(1)

    @pl.when(k == 0)
    def _():
        acc_ref[...] = jnp.zeros_like(acc_ref)

    x = x_ref[...]
    xb = x.astype(jnp.bfloat16)
    h = jnp.dot(xb, w1_ref[...], preferred_element_type=jnp.float32) + b1_ref[...]
    h = jnp.maximum(h, 0.0)
    acc_ref[...] += jnp.dot(h.astype(jnp.bfloat16), w2_ref[...],
                            preferred_element_type=jnp.float32)

    @pl.when(k == pl.num_programs(1) - 1)
    def _():
        y = acc_ref[...] + b2_ref[...]
        yb = y.astype(jnp.bfloat16)
        comb = (jnp.dot(xb, wx_ref[...], preferred_element_type=jnp.float32) + bx_ref[...]
                + jnp.dot(yb, wy_ref[...], preferred_element_type=jnp.float32) + by_ref[...])
        r = jax.nn.sigmoid(comb)
        z = jax.nn.sigmoid(comb - gb_ref[...])
        hc = jnp.tanh(jnp.dot((r * x + y).astype(jnp.bfloat16), wh_ref[...],
                              preferred_element_type=jnp.float32) + bh_ref[...])
        o_ref[...] = ((1.0 - z) * x + z * hc).astype(o_ref.dtype)


def _pick_row_tile(n, limit):
    cap = 2048 if limit >= 80 * 1024 * 1024 else 512
    return min(n, cap)


def _pick_dff_tile(dff, limit):
    target = 2048 if limit >= 80 * 1024 * 1024 else 1024
    if dff <= target:
        return dff
    for cand in (4096, 2048, 1024, 512, 256, 128):   # 128-aligned divisors only
        if cand <= target and dff % cand == 0:
            return cand
    return dff


def ff_gating(x, p, tn=None, tdff=None):
    n, d = x.shape
    dff = p["w1"].shape[1]
    limit = _vmem_limit_bytes()
    if tn is None:
        tn = _pick_row_tile(n, limit)
    if tdff is None:
        tdff = _pick_dff_tile(dff, limit)
    assert dff % tdff == 0, "d_ff tile must divide d_ff"
    g2 = p["gate2"]

    row = pl.BlockSpec((tn, d), lambda i, k: (i, 0))
    res_w = pl.BlockSpec((d, d), lambda i, k: (0, 0), pipeline_mode=pl.Buffered(1))
    res_b = pl.BlockSpec((1, d), lambda i, k: (0, 0), pipeline_mode=pl.Buffered(1))

    flops = 4 * n * d * dff + 6 * n * d * d
    trans = 3 * n * d
    bytes_acc = 8 * n * d + (2 * d * dff + 3 * d * d) * 2

    return pl.pallas_call(
        _ff_gate2_kernel,
        out_shape=jax.ShapeDtypeStruct((n, d), jnp.float32),
        grid=(pl.cdiv(n, tn), dff // tdff),
        in_specs=[
            row,                                             # x = gate1 output
            pl.BlockSpec((d, tdff), lambda i, k: (0, k)),    # w1 column tile
            pl.BlockSpec((1, tdff), lambda i, k: (0, k)),    # b1 column tile
            pl.BlockSpec((tdff, d), lambda i, k: (k, 0)),    # w2 row tile
            res_b,                                           # b2
            res_w, res_b,                                    # wx, bx
            res_w, res_b,                                    # wy, by
            res_w, res_b,                                    # wh, bh
            res_b,                                           # gbias
        ],
        out_specs=row,
        scratch_shapes=[pltpu.VMEM((tn, d), jnp.float32)],
        compiler_params=pltpu.CompilerParams(
            dimension_semantics=("parallel", "arbitrary"),
            vmem_limit_bytes=limit),
        cost_estimate=pl.CostEstimate(flops=int(flops),
                                      transcendentals=int(trans),
                                      bytes_accessed=int(bytes_acc)),
    )(x, p["w1"], p["b1"], p["w2"], p["b2"],
      g2["wx"], g2["bx"], g2["wy"], g2["by"], g2["wh"], g2["bh"], g2["gbias"])


# --------------------------------------------------------------------------
# Parameter prep (one-time bf16 cast of MXU weights, split of packed in_proj)
# --------------------------------------------------------------------------
def _prep(params):
    bf = jnp.bfloat16
    D = params["w_out"].shape[0]
    w_in, b_in = params["w_in"], params["b_in"]

    def gate(gp):
        return {"wx": gp["wx"].astype(bf), "bx": gp["bx"],
                "wy": gp["wy"].astype(bf), "by": gp["by"],
                "wh": gp["wh"].astype(bf), "bh": gp["bh"],
                "gbias": gp["gbias"]}

    return {
        "wq": w_in[:, :D].astype(bf), "bq": b_in[:, :D],
        "wk": w_in[:, D:2 * D].astype(bf), "bk": b_in[:, D:2 * D],
        "wv": w_in[:, 2 * D:].astype(bf), "bv": b_in[:, 2 * D:],
        "wo": params["w_out"].astype(bf), "bo": params["b_out"],
        "gate1": gate(params["gate1"]), "gate2": gate(params["gate2"]),
        "w1": params["ff"]["w1"].astype(bf), "b1": params["ff"]["b1"],
        "w2": params["ff"]["w2"].astype(bf), "b2": params["ff"]["b2"],
    }


# --------------------------------------------------------------------------
# GatedTransfoXLLayer forward (attn_mask=None; `mems` unused by the module)
# --------------------------------------------------------------------------
def gated_trxl_layer(hidden, params, n_head, ff_tn=None, ff_tdff=None):
    S, B, D = hidden.shape
    p = _prep(params)
    g1 = attention_gate1(hidden, p, n_head)                   # (S, B, 1, D)
    out = ff_gating(g1.reshape(S * B, D), p, tn=ff_tn, tdff=ff_tdff)
    return out.reshape(S, B, D)                               # free reshape


# --------------------------------------------------------------------------
# Pure-JAX f32 reference (mirrors the PyTorch math)
# --------------------------------------------------------------------------
def reference(hidden, params, n_head):
    S, B, D = hidden.shape
    H = n_head
    hd = D // H
    hp = jax.lax.Precision.HIGHEST

    def dot(a, b):
        return jnp.dot(a, b, precision=hp)

    x = hidden.reshape(S * B, D)
    qkv = dot(x, params["w_in"]) + params["b_in"]
    q, k, v = qkv[:, :D], qkv[:, D:2 * D], qkv[:, 2 * D:]

    def split(t):
        return t.reshape(S, B, H, hd).transpose(1, 2, 0, 3).reshape(B * H, S, hd)

    qh, kh, vh = split(q), split(k), split(v)
    s = jnp.einsum("nsd,ntd->nst", qh, kh, precision=hp) / np.sqrt(hd)
    pa = jax.nn.softmax(s, axis=-1)
    oh = jnp.einsum("nst,ntd->nsd", pa, vh, precision=hp)
    attn = oh.reshape(B, H, S, hd).transpose(2, 0, 1, 3).reshape(S * B, D)
    attn = dot(attn, params["w_out"]) + params["b_out"]

    def gate_ref(xx, yy, gp):
        comb = dot(xx, gp["wx"]) + gp["bx"] + dot(yy, gp["wy"]) + gp["by"]
        r = jax.nn.sigmoid(comb)
        z = jax.nn.sigmoid(comb - gp["gbias"])
        h = jnp.tanh(dot(r * xx + yy, gp["wh"]) + gp["bh"])
        return (1.0 - z) * xx + z * h

    g1 = gate_ref(x, attn, params["gate1"])
    ffh = jnp.maximum(dot(g1, params["ff"]["w1"]) + params["ff"]["b1"], 0.0)
    ffo = dot(ffh, params["ff"]["w2"]) + params["ff"]["b2"]
    g2 = gate_ref(g1, ffo, params["gate2"])
    return g2.reshape(S, B, D)


# --------------------------------------------------------------------------
# Deterministic synthetic parameter init
# --------------------------------------------------------------------------
def init_params(key, d_model, d_ff):
    keys = iter(jax.random.split(key, 20))

    def w(shape):
        return jax.random.normal(next(keys), shape, jnp.float32) * 0.1

    def gate_params():
        return {
            "wx": w((d_model, d_model)), "bx": w((1, d_model)),
            "wy": w((d_model, d_model)), "by": w((1, d_model)),
            "wh": w((d_model, d_model)), "bh": w((1, d_model)),
            # Gating(..., bias=0.0) in the module
            "gbias": jnp.zeros((1, d_model), jnp.float32),
        }

    return {
        "w_in": w((d_model, 3 * d_model)),   # MHA packed in_proj, (in, out)
        "b_in": w((1, 3 * d_model)),
        "w_out": w((d_model, d_model)),      # MHA out_proj
        "b_out": w((1, d_model)),
        "gate1": gate_params(),
        "ff": {
            "w1": w((d_model, d_ff)), "b1": w((1, d_ff)),
            "w2": w((d_ff, d_model)), "b2": w((1, d_model)),
        },
        "gate2": gate_params(),
    }


if __name__ == "__main__":
    # Config 1: tiny smoke test (S, B, D, H, d_ff).
    S, B, D, H, DFF = 8, 2, 32, 4, 64
    pkey, hkey = jax.random.split(jax.random.PRNGKey(0))
    params = init_params(pkey, D, DFF)
    hidden = jax.random.normal(hkey, (S, B, D), jnp.float32)

    fwd = jax.jit(functools.partial(gated_trxl_layer, n_head=H))
    out = jax.block_until_ready(fwd(hidden, params))
    ref = jax.block_until_ready(reference(hidden, params, H))
    # bf16 MXU operands + approx reciprocal in softmax -> looser tolerance vs f32 ref
    np.testing.assert_allclose(np.asarray(out), np.asarray(ref), atol=5e-2, rtol=5e-2)

    # Config 2: exercises multiple row tiles and a multi-step d_ff reduction.
    S2, B2, D2, H2, DFF2 = 8, 2, 32, 4, 256
    pkey2, hkey2 = jax.random.split(jax.random.PRNGKey(1))
    params2 = init_params(pkey2, D2, DFF2)
    hidden2 = jax.random.normal(hkey2, (S2, B2, D2), jnp.float32)
    fwd2 = jax.jit(functools.partial(gated_trxl_layer, n_head=H2,
                                     ff_tn=8, ff_tdff=128))
    out2 = jax.block_until_ready(fwd2(hidden2, params2))
    ref2 = jax.block_until_ready(reference(hidden2, params2, H2))
    np.testing.assert_allclose(np.asarray(out2), np.asarray(ref2), atol=5e-2, rtol=5e-2)

    print("KERNEL_OK")
</pallas_src>

<mosaic_0001>
module attributes {stable_mosaic.version = 11 : i64} {
  func.func @_attn_gate1_kernel(%arg0: i32, %arg1: memref<8x1x1x32xf32, #tpu.memory_space<vmem>>, %arg2: memref<32x32xbf16, #tpu.memory_space<vmem>>, %arg3: memref<1x32xf32, #tpu.memory_space<vmem>>, %arg4: memref<32x32xbf16, #tpu.memory_space<vmem>>, %arg5: memref<1x32xf32, #tpu.memory_space<vmem>>, %arg6: memref<32x32xbf16, #tpu.memory_space<vmem>>, %arg7: memref<1x32xf32, #tpu.memory_space<vmem>>, %arg8: memref<4x8x32xbf16, #tpu.memory_space<vmem>>, %arg9: memref<1x32xf32, #tpu.memory_space<vmem>>, %arg10: memref<32x32xbf16, #tpu.memory_space<vmem>>, %arg11: memref<1x32xf32, #tpu.memory_space<vmem>>, %arg12: memref<32x32xbf16, #tpu.memory_space<vmem>>, %arg13: memref<1x32xf32, #tpu.memory_space<vmem>>, %arg14: memref<32x32xbf16, #tpu.memory_space<vmem>>, %arg15: memref<1x32xf32, #tpu.memory_space<vmem>>, %arg16: memref<1x32xf32, #tpu.memory_space<vmem>>, %arg17: memref<8x1x1x32xf32, #tpu.memory_space<vmem>>) attributes {dimension_semantics = [#tpu.dimension_semantics<parallel>], iteration_bounds = array<i64: 2>, scalar_prefetch = 0 : i64, scratch_operands = 0 : i64, tpu.core_type = #tpu.core_type<tc>, window_params = [{transform_indices = @transform_0, window_bounds = array<i64: 8, 1, 1, 32>}, {pipeline_mode = #tpu.pipeline_mode<synchronous>, transform_indices = @transform_1, window_bounds = array<i64: 32, 32>}, {pipeline_mode = #tpu.pipeline_mode<synchronous>, transform_indices = @transform_2, window_bounds = array<i64: 1, 32>}, {pipeline_mode = #tpu.pipeline_mode<synchronous>, transform_indices = @transform_3, window_bounds = array<i64: 32, 32>}, {pipeline_mode = #tpu.pipeline_mode<synchronous>, transform_indices = @transform_4, window_bounds = array<i64: 1, 32>}, {pipeline_mode = #tpu.pipeline_mode<synchronous>, transform_indices = @transform_5, window_bounds = array<i64: 32, 32>}, {pipeline_mode = #tpu.pipeline_mode<synchronous>, transform_indices = @transform_6, window_bounds = array<i64: 1, 32>}, {pipeline_mode = #tpu.pipeline_mode<synchronous>, transform_indices = @transform_7, window_bounds = array<i64: 4, 8, 32>}, {pipeline_mode = #tpu.pipeline_mode<synchronous>, transform_indices = @transform_8, window_bounds = array<i64: 1, 32>}, {pipeline_mode = #tpu.pipeline_mode<synchronous>, transform_indices = @transform_9, window_bounds = array<i64: 32, 32>}, {pipeline_mode = #tpu.pipeline_mode<synchronous>, transform_indices = @transform_10, window_bounds = array<i64: 1, 32>}, {pipeline_mode = #tpu.pipeline_mode<synchronous>, transform_indices = @transform_11, window_bounds = array<i64: 32, 32>}, {pipeline_mode = #tpu.pipeline_mode<synchronous>, transform_indices = @transform_12, window_bounds = array<i64: 1, 32>}, {pipeline_mode = #tpu.pipeline_mode<synchronous>, transform_indices = @transform_13, window_bounds = array<i64: 32, 32>}, {pipeline_mode = #tpu.pipeline_mode<synchronous>, transform_indices = @transform_14, window_bounds = array<i64: 1, 32>}, {pipeline_mode = #tpu.pipeline_mode<synchronous>, transform_indices = @transform_15, window_bounds = array<i64: 1, 32>}, {transform_indices = @transform_16, window_bounds = array<i64: 8, 1, 1, 32>}]} {
    %c0 = arith.constant 0 : index
    %c0_0 = arith.constant 0 : index
    %c0_1 = arith.constant 0 : index
    %c0_2 = arith.constant 0 : index
    %0 = vector.load %arg1[%c0, %c0_0, %c0_1, %c0_2] : memref<8x1x1x32xf32, #tpu.memory_space<vmem>>, vector<8x1x1x32xf32>
    %1 = vector.shape_cast %0 : vector<8x1x1x32xf32> to vector<8x32xf32>
    %2 = arith.truncf %1 : vector<8x32xf32> to vector<8x32xbf16>
    %c0_3 = arith.constant 0 : index
    %c0_4 = arith.constant 0 : index
    %3 = vector.load %arg2[%c0_3, %c0_4] : memref<32x32xbf16, #tpu.memory_space<vmem>>, vector<32x32xbf16>
    %cst = arith.constant dense<0.000000e+00> : vector<8x32xf32>
    %4 = tpu.matmul %2, %3, %cst {dimension_numbers = #tpu.dot_dimension_numbers<[1], [0], [0], [1], [0, 0, 1, 1], [], []>} : vector<8x32xbf16>, vector<32x32xbf16>, vector<8x32xf32> -> vector<8x32xf32>
    %c0_5 = arith.constant 0 : index
    %c0_6 = arith.constant 0 : index
    %5 = vector.load %arg3[%c0_5, %c0_6] : memref<1x32xf32, #tpu.memory_space<vmem>>, vector<1x32xf32>
    %6 = vector.broadcast %5 : vector<1x32xf32> to vector<8x32xf32>
    %7 = arith.addf %4, %6 : vector<8x32xf32>
    %cst_7 = arith.constant 0.353553385 : f32
    %8 = vector.broadcast %cst_7 : f32 to vector<8x32xf32>
    %9 = arith.mulf %7, %8 : vector<8x32xf32>
    %10 = arith.truncf %9 : vector<8x32xf32> to vector<8x32xbf16>
    %c0_8 = arith.constant 0 : index
    %c0_9 = arith.constant 0 : index
    %11 = vector.load %arg4[%c0_8, %c0_9] : memref<32x32xbf16, #tpu.memory_space<vmem>>, vector<32x32xbf16>
    %cst_10 = arith.constant dense<0.000000e+00> : vector<8x32xf32>
    %12 = tpu.matmul %2, %11, %cst_10 {dimension_numbers = #tpu.dot_dimension_numbers<[1], [0], [0], [1], [0, 0, 1, 1], [], []>} : vector<8x32xbf16>, vector<32x32xbf16>, vector<8x32xf32> -> vector<8x32xf32>
    %c0_11 = arith.constant 0 : index
    %c0_12 = arith.constant 0 : index
    %13 = vector.load %arg5[%c0_11, %c0_12] : memref<1x32xf32, #tpu.memory_space<vmem>>, vector<1x32xf32>
    %14 = vector.broadcast %13 : vector<1x32xf32> to vector<8x32xf32>
    %15 = arith.addf %12, %14 : vector<8x32xf32>
    %16 = arith.truncf %15 : vector<8x32xf32> to vector<8x32xbf16>
    %c0_13 = arith.constant 0 : index
    %c0_14 = arith.constant 0 : index
    %17 = vector.load %arg6[%c0_13, %c0_14] : memref<32x32xbf16, #tpu.memory_space<vmem>>, vector<32x32xbf16>
    %cst_15 = arith.constant dense<0.000000e+00> : vector<8x32xf32>
    %18 = tpu.matmul %2, %17, %cst_15 {dimension_numbers = #tpu.dot_dimension_numbers<[1], [0], [0], [1], [0, 0, 1, 1], [], []>} : vector<8x32xbf16>, vector<32x32xbf16>, vector<8x32xf32> -> vector<8x32xf32>
    %c0_16 = arith.constant 0 : index
    %c0_17 = arith.constant 0 : index
    %19 = vector.load %arg7[%c0_16, %c0_17] : memref<1x32xf32, #tpu.memory_space<vmem>>, vector<1x32xf32>
    %20 = vector.broadcast %19 : vector<1x32xf32> to vector<8x32xf32>
    %21 = arith.addf %18, %20 : vector<8x32xf32>
    %22 = arith.truncf %21 : vector<8x32xf32> to vector<8x32xbf16>
    %23 = vector.shape_cast %10 : vector<8x32xbf16> to vector<8x4x8xbf16>
    %24 = vector.shape_cast %16 : vector<8x32xbf16> to vector<8x4x8xbf16>
    %25 = vector.shape_cast %22 : vector<8x32xbf16> to vector<8x4x8xbf16>
    "tpu.trace_start"() <{level = 10 : i32, message = "qhd,khd->hqk"}> : () -> ()
    %cst_18 = arith.constant dense<0.000000e+00> : vector<4x8x8xf32>
    %26 = tpu.matmul %23, %24, %cst_18 {dimension_numbers = #tpu.dot_dimension_numbers<[2], [2], [0], [0], [0, 1, 0, 0, 1, 0], [1], [1]>} : vector<8x4x8xbf16>, vector<8x4x8xbf16>, vector<4x8x8xf32> -> vector<4x8x8xf32>
    "tpu.trace_stop"() : () -> ()
    %cst_19 = arith.constant dense<0xFF800000> : vector<4x8xf32>
    %27 = vector.multi_reduction <maximumf>, %26, %cst_19 [2] : vector<4x8x8xf32> to vector<4x8xf32>
    %28 = vector.shape_cast %27 : vector<4x8xf32> to vector<4x8x1xf32>
    %29 = vector.broadcast %28 : vector<4x8x1xf32> to vector<4x8x8xf32>
    %30 = arith.subf %26, %29 : vector<4x8x8xf32>
    %31 = math.exp %30 : vector<4x8x8xf32>
    %cst_20 = arith.constant dense<0.000000e+00> : vector<4x8xf32>
    %32 = vector.multi_reduction <add>, %31, %cst_20 [2] : vector<4x8x8xf32> to vector<4x8xf32>
    %33 = vector.shape_cast %32 : vector<4x8xf32> to vector<4x8x1xf32>
    %34 = tpu.reciprocal %33 {approx = true} : vector<4x8x1xf32> -> vector<4x8x1xf32>
    %35 = vector.broadcast %34 : vector<4x8x1xf32> to vector<4x8x8xf32>
    %36 = arith.mulf %31, %35 : vector<4x8x8xf32>
    %37 = arith.truncf %36 : vector<4x8x8xf32> to vector<4x8x8xbf16>
    "tpu.trace_start"() <{level = 10 : i32, message = "hqk,khd->hqd"}> : () -> ()
    %cst_21 = arith.constant dense<0.000000e+00> : vector<4x8x8xf32>
    %38 = tpu.matmul %37, %25, %cst_21 {dimension_numbers = #tpu.dot_dimension_numbers<[2], [0], [1], [2], [0, 0, 0, 1, 1, 2], [0], [1]>} : vector<4x8x8xbf16>, vector<8x4x8xbf16>, vector<4x8x8xf32> -> vector<4x8x8xf32>
    "tpu.trace_stop"() : () -> ()
    %39 = arith.truncf %38 : vector<4x8x8xf32> to vector<4x8x8xbf16>
    %c0_22 = arith.constant 0 : index
    %c0_23 = arith.constant 0 : index
    %c0_24 = arith.constant 0 : index
    %40 = vector.load %arg8[%c0_22, %c0_23, %c0_24] : memref<4x8x32xbf16, #tpu.memory_space<vmem>>, vector<4x8x32xbf16>
    "tpu.trace_start"() <{level = 10 : i32, message = "hqd,hdm->hqm"}> : () -> ()
    %cst_25 = arith.constant dense<0.000000e+00> : vector<4x8x32xf32>
    %41 = tpu.matmul %39, %40, %cst_25 {dimension_numbers = #tpu.dot_dimension_numbers<[2], [1], [1], [2], [0, 0, 0, 1, 1, 2], [0], [0]>} : vector<4x8x8xbf16>, vector<4x8x32xbf16>, vector<4x8x32xf32> -> vector<4x8x32xf32>
    "tpu.trace_stop"() : () -> ()
    %cst_26 = arith.constant dense<0.000000e+00> : vector<8x32xf32>
    %42 = vector.multi_reduction <add>, %41, %cst_26 [0] : vector<4x8x32xf32> to vector<8x32xf32>
    %c0_27 = arith.constant 0 : index
    %c0_28 = arith.constant 0 : index
    %43 = vector.load %arg9[%c0_27, %c0_28] : memref<1x32xf32, #tpu.memory_space<vmem>>, vector<1x32xf32>
    %44 = vector.broadcast %43 : vector<1x32xf32> to vector<8x32xf32>
    %45 = arith.addf %42, %44 : vector<8x32xf32>
    %46 = arith.truncf %45 : vector<8x32xf32> to vector<8x32xbf16>
    %c0_29 = arith.constant 0 : index
    %c0_30 = arith.constant 0 : index
    %47 = vector.load %arg10[%c0_29, %c0_30] : memref<32x32xbf16, #tpu.memory_space<vmem>>, vector<32x32xbf16>
    %cst_31 = arith.constant dense<0.000000e+00> : vector<8x32xf32>
    %48 = tpu.matmul %2, %47, %cst_31 {dimension_numbers = #tpu.dot_dimension_numbers<[1], [0], [0], [1], [0, 0, 1, 1], [], []>} : vector<8x32xbf16>, vector<32x32xbf16>, vector<8x32xf32> -> vector<8x32xf32>
    %c0_32 = arith.constant 0 : index
    %c0_33 = arith.constant 0 : index
    %49 = vector.load %arg11[%c0_32, %c0_33] : memref<1x32xf32, #tpu.memory_space<vmem>>, vector<1x32xf32>
    %50 = vector.broadcast %49 : vector<1x32xf32> to vector<8x32xf32>
    %51 = arith.addf %48, %50 : vector<8x32xf32>
    %c0_34 = arith.constant 0 : index
    %c0_35 = arith.constant 0 : index
    %52 = vector.load %arg12[%c0_34, %c0_35] : memref<32x32xbf16, #tpu.memory_space<vmem>>, vector<32x32xbf16>
    %cst_36 = arith.constant dense<0.000000e+00> : vector<8x32xf32>
    %53 = tpu.matmul %46, %52, %cst_36 {dimension_numbers = #tpu.dot_dimension_numbers<[1], [0], [0], [1], [0, 0, 1, 1], [], []>} : vector<8x32xbf16>, vector<32x32xbf16>, vector<8x32xf32> -> vector<8x32xf32>
    %54 = arith.addf %51, %53 : vector<8x32xf32>
    %c0_37 = arith.constant 0 : index
    %c0_38 = arith.constant 0 : index
    %55 = vector.load %arg13[%c0_37, %c0_38] : memref<1x32xf32, #tpu.memory_space<vmem>>, vector<1x32xf32>
    %56 = vector.broadcast %55 : vector<1x32xf32> to vector<8x32xf32>
    %57 = arith.addf %54, %56 : vector<8x32xf32>
    %58 = arith.negf %57 : vector<8x32xf32>
    %59 = math.exp %58 : vector<8x32xf32>
    %cst_39 = arith.constant 1.000000e+00 : f32
    %60 = vector.broadcast %cst_39 : f32 to vector<8x32xf32>
    %61 = arith.addf %60, %59 : vector<8x32xf32>
    %62 = arith.divf %60, %61 : vector<8x32xf32>
    %c0_40 = arith.constant 0 : index
    %c0_41 = arith.constant 0 : index
    %63 = vector.load %arg16[%c0_40, %c0_41] : memref<1x32xf32, #tpu.memory_space<vmem>>, vector<1x32xf32>
    %64 = vector.broadcast %63 : vector<1x32xf32> to vector<8x32xf32>
    %65 = arith.subf %57, %64 : vector<8x32xf32>
    %66 = arith.negf %65 : vector<8x32xf32>
    %67 = math.exp %66 : vector<8x32xf32>
    %cst_42 = arith.constant 1.000000e+00 : f32
    %68 = vector.broadcast %cst_42 : f32 to vector<8x32xf32>
    %69 = arith.addf %68, %67 : vector<8x32xf32>
    %70 = arith.divf %68, %69 : vector<8x32xf32>
    %71 = arith.mulf %62, %1 : vector<8x32xf32>
    %72 = arith.addf %71, %45 : vector<8x32xf32>
    %73 = arith.truncf %72 : vector<8x32xf32> to vector<8x32xbf16>
    %c0_43 = arith.constant 0 : index
    %c0_44 = arith.constant 0 : index
    %74 = vector.load %arg14[%c0_43, %c0_44] : memref<32x32xbf16, #tpu.memory_space<vmem>>, vector<32x32xbf16>
    %cst_45 = arith.constant dense<0.000000e+00> : vector<8x32xf32>
    %75 = tpu.matmul %73, %74, %cst_45 {dimension_numbers = #tpu.dot_dimension_numbers<[1], [0], [0], [1], [0, 0, 1, 1], [], []>} : vector<8x32xbf16>, vector<32x32xbf16>, vector<8x32xf32> -> vector<8x32xf32>
    %c0_46 = arith.constant 0 : index
    %c0_47 = arith.constant 0 : index
    %76 = vector.load %arg15[%c0_46, %c0_47] : memref<1x32xf32, #tpu.memory_space<vmem>>, vector<1x32xf32>
    %77 = vector.broadcast %76 : vector<1x32xf32> to vector<8x32xf32>
    %78 = arith.addf %75, %77 : vector<8x32xf32>
    %79 = math.tanh %78 : vector<8x32xf32>
    %cst_48 = arith.constant 1.000000e+00 : f32
    %80 = vector.broadcast %cst_48 : f32 to vector<8x32xf32>
    %81 = arith.subf %80, %70 : vector<8x32xf32>
    %82 = arith.mulf %81, %1 : vector<8x32xf32>
    %83 = arith.mulf %70, %79 : vector<8x32xf32>
    %84 = arith.addf %82, %83 : vector<8x32xf32>
    %c0_49 = arith.constant 0 : index
    %c0_50 = arith.constant 0 : index
    %c0_51 = arith.constant 0 : index
    %c0_52 = arith.constant 0 : index
    %85 = vector.load %arg17[%c0_49, %c0_50, %c0_51, %c0_52] : memref<8x1x1x32xf32, #tpu.memory_space<vmem>>, vector<8x1x1x32xf32>
    %86 = vector.shape_cast %85 : vector<8x1x1x32xf32> to vector<8x32xf32>
    %87 = vector.shape_cast %84 : vector<8x32xf32> to vector<8x1x1x32xf32>
    tpu.vector_store %arg17[%c0_49, %c0_50, %c0_51, %c0_52], %87 {strides = array<i32>} : memref<8x1x1x32xf32, #tpu.memory_space<vmem>>, vector<8x1x1x32xf32>,
    return
  }
  func.func @transform_0(%arg0: i32) -> (i32, i32, i32, i32) {
    %c0_i32 = arith.constant 0 : i32
    %c0_i32_0 = arith.constant 0 : i32
    %c0_i32_1 = arith.constant 0 : i32
    %c0_i32_2 = arith.constant 0 : i32
    return %c0_i32, %arg0, %c0_i32_0, %c0_i32_1 : i32, i32, i32, i32
  }
  func.func @transform_1(%arg0: i32) -> (i32, i32) {
    %c0_i32 = arith.constant 0 : i32
    %c0_i32_0 = arith.constant 0 : i32
    %c0_i32_1 = arith.constant 0 : i32
    return %c0_i32, %c0_i32_0 : i32, i32
  }
  func.func @transform_2(%arg0: i32) -> (i32, i32) {
    %c0_i32 = arith.constant 0 : i32
    %c0_i32_0 = arith.constant 0 : i32
    %c0_i32_1 = arith.constant 0 : i32
    return %c0_i32, %c0_i32_0 : i32, i32
  }
  func.func @transform_3(%arg0: i32) -> (i32, i32) {
    %c0_i32 = arith.constant 0 : i32
    %c0_i32_0 = arith.constant 0 : i32
    %c0_i32_1 = arith.constant 0 : i32
    return %c0_i32, %c0_i32_0 : i32, i32
  }
  func.func @transform_4(%arg0: i32) -> (i32, i32) {
    %c0_i32 = arith.constant 0 : i32
    %c0_i32_0 = arith.constant 0 : i32
    %c0_i32_1 = arith.constant 0 : i32
    return %c0_i32, %c0_i32_0 : i32, i32
  }
  func.func @transform_5(%arg0: i32) -> (i32, i32) {
    %c0_i32 = arith.constant 0 : i32
    %c0_i32_0 = arith.constant 0 : i32
    %c0_i32_1 = arith.constant 0 : i32
    return %c0_i32, %c0_i32_0 : i32, i32
  }
  func.func @transform_6(%arg0: i32) -> (i32, i32) {
    %c0_i32 = arith.constant 0 : i32
    %c0_i32_0 = arith.constant 0 : i32
    %c0_i32_1 = arith.constant 0 : i32
    return %c0_i32, %c0_i32_0 : i32, i32
  }
  func.func @transform_7(%arg0: i32) -> (i32, i32, i32) {
    %c0_i32 = arith.constant 0 : i32
    %c0_i32_0 = arith.constant 0 : i32
    %c0_i32_1 = arith.constant 0 : i32
    %c0_i32_2 = arith.constant 0 : i32
    return %c0_i32, %c0_i32_0, %c0_i32_1 : i32, i32, i32
  }
  func.func @transform_8(%arg0: i32) -> (i32, i32) {
    %c0_i32 = arith.constant 0 : i32
    %c0_i32_0 = arith.constant 0 : i32
    %c0_i32_1 = arith.constant 0 : i32
    return %c0_i32, %c0_i32_0 : i32, i32
  }
  func.func @transform_9(%arg0: i32) -> (i32, i32) {
    %c0_i32 = arith.constant 0 : i32
    %c0_i32_0 = arith.constant 0 : i32
    %c0_i32_1 = arith.constant 0 : i32
    return %c0_i32, %c0_i32_0 : i32, i32
  }
  func.func @transform_10(%arg0: i32) -> (i32, i32) {
    %c0_i32 = arith.constant 0 : i32
    %c0_i32_0 = arith.constant 0 : i32
    %c0_i32_1 = arith.constant 0 : i32
    return %c0_i32, %c0_i32_0 : i32, i32
  }
  func.func @transform_11(%arg0: i32) -> (i32, i32) {
    %c0_i32 = arith.constant 0 : i32
    %c0_i32_0 = arith.constant 0 : i32
    %c0_i32_1 = arith.constant 0 : i32
    return %c0_i32, %c0_i32_0 : i32, i32
  }
  func.func @transform_12(%arg0: i32) -> (i32, i32) {
    %c0_i32 = arith.constant 0 : i32
    %c0_i32_0 = arith.constant 0 : i32
    %c0_i32_1 = arith.constant 0 : i32
    return %c0_i32, %c0_i32_0 : i32, i32
  }
  func.func @transform_13(%arg0: i32) -> (i32, i32) {
    %c0_i32 = arith.constant 0 : i32
    %c0_i32_0 = arith.constant 0 : i32
    %c0_i32_1 = arith.constant 0 : i32
    return %c0_i32, %c0_i32_0 : i32, i32
  }
  func.func @transform_14(%arg0: i32) -> (i32, i32) {
    %c0_i32 = arith.constant 0 : i32
    %c0_i32_0 = arith.constant 0 : i32
    %c0_i32_1 = arith.constant 0 : i32
    return %c0_i32, %c0_i32_0 : i32, i32
  }
  func.func @transform_15(%arg0: i32) -> (i32, i32) {
    %c0_i32 = arith.constant 0 : i32
    %c0_i32_0 = arith.constant 0 : i32
    %c0_i32_1 = arith.constant 0 : i32
    return %c0_i32, %c0_i32_0 : i32, i32
  }
  func.func @transform_16(%arg0: i32) -> (i32, i32, i32, i32) {
    %c0_i32 = arith.constant 0 : i32
    %c0_i32_0 = arith.constant 0 : i32
    %c0_i32_1 = arith.constant 0 : i32
    %c0_i32_2 = arith.constant 0 : i32
    return %c0_i32, %arg0, %c0_i32_0, %c0_i32_1 : i32, i32, i32, i32
  }
}

module attributes {stable_mosaic.version = 11 : i64} {
  func.func @_ff_gate2_kernel(%arg0: i32, %arg1: i32, %arg2: memref<16x32xf32, #tpu.memory_space<vmem>>, %arg3: memref<32x64xbf16, #tpu.memory_space<vmem>>, %arg4: memref<1x64xf32, #tpu.memory_space<vmem>>, %arg5: memref<64x32xbf16, #tpu.memory_space<vmem>>, %arg6: memref<1x32xf32, #tpu.memory_space<vmem>>, %arg7: memref<32x32xbf16, #tpu.memory_space<vmem>>, %arg8: memref<1x32xf32, #tpu.memory_space<vmem>>, %arg9: memref<32x32xbf16, #tpu.memory_space<vmem>>, %arg10: memref<1x32xf32, #tpu.memory_space<vmem>>, %arg11: memref<32x32xbf16, #tpu.memory_space<vmem>>, %arg12: memref<1x32xf32, #tpu.memory_space<vmem>>, %arg13: memref<1x32xf32, #tpu.memory_space<vmem>>, %arg14: memref<16x32xf32, #tpu.memory_space<vmem>>, %arg15: memref<16x32xf32, #tpu.memory_space<vmem>>) attributes {dimension_semantics = [#tpu.dimension_semantics<parallel>, #tpu.dimension_semantics<arbitrary>], iteration_bounds = array<i64: 1, 1>, scalar_prefetch = 0 : i64, scratch_operands = 1 : i64, tpu.core_type = #tpu.core_type<tc>, window_params = [{transform_indices = @transform_0, window_bounds = array<i64: 16, 32>}, {transform_indices = @transform_1, window_bounds = array<i64: 32, 64>}, {transform_indices = @transform_2, window_bounds = array<i64: 1, 64>}, {transform_indices = @transform_3, window_bounds = array<i64: 64, 32>}, {pipeline_mode = #tpu.pipeline_mode<synchronous>, transform_indices = @transform_4, window_bounds = array<i64: 1, 32>}, {pipeline_mode = #tpu.pipeline_mode<synchronous>, transform_indices = @transform_5, window_bounds = array<i64: 32, 32>}, {pipeline_mode = #tpu.pipeline_mode<synchronous>, transform_indices = @transform_6, window_bounds = array<i64: 1, 32>}, {pipeline_mode = #tpu.pipeline_mode<synchronous>, transform_indices = @transform_7, window_bounds = array<i64: 32, 32>}, {pipeline_mode = #tpu.pipeline_mode<synchronous>, transform_indices = @transform_8, window_bounds = array<i64: 1, 32>}, {pipeline_mode = #tpu.pipeline_mode<synchronous>, transform_indices = @transform_9, window_bounds = array<i64: 32, 32>}, {pipeline_mode = #tpu.pipeline_mode<synchronous>, transform_indices = @transform_10, window_bounds = array<i64: 1, 32>}, {pipeline_mode = #tpu.pipeline_mode<synchronous>, transform_indices = @transform_11, window_bounds = array<i64: 1, 32>}, {transform_indices = @transform_12, window_bounds = array<i64: 16, 32>}]} {
    %c0_i32 = arith.constant 0 : i32
    %0 = arith.cmpi eq, %arg1, %c0_i32 : i32
    %1 = arith.extui %0 : i1 to i32
    %c0_i32_0 = arith.constant 0 : i32
    %2 = arith.cmpi ne, %1, %c0_i32_0 : i32
    scf.if %2 {
      %cst_16 = arith.constant 0.000000e+00 : f32
      %21 = vector.broadcast %cst_16 : f32 to vector<16x32xf32>
      %c0_17 = arith.constant 0 : index
      %c0_18 = arith.constant 0 : index
      %22 = vector.load %arg15[%c0_17, %c0_18] : memref<16x32xf32, #tpu.memory_space<vmem>>, vector<16x32xf32>
      tpu.vector_store %arg15[%c0_17, %c0_18], %21 {strides = array<i32>} : memref<16x32xf32, #tpu.memory_space<vmem>>, vector<16x32xf32>,
    } else {
    }
    %c0 = arith.constant 0 : index
    %c0_1 = arith.constant 0 : index
    %3 = vector.load %arg2[%c0, %c0_1] : memref<16x32xf32, #tpu.memory_space<vmem>>, vector<16x32xf32>
    %4 = arith.truncf %3 : vector<16x32xf32> to vector<16x32xbf16>
    %c0_2 = arith.constant 0 : index
    %c0_3 = arith.constant 0 : index
    %5 = vector.load %arg3[%c0_2, %c0_3] : memref<32x64xbf16, #tpu.memory_space<vmem>>, vector<32x64xbf16>
    %cst = arith.constant dense<0.000000e+00> : vector<16x64xf32>
    %6 = tpu.matmul %4, %5, %cst {dimension_numbers = #tpu.dot_dimension_numbers<[1], [0], [0], [1], [0, 0, 1, 1], [], []>} : vector<16x32xbf16>, vector<32x64xbf16>, vector<16x64xf32> -> vector<16x64xf32>
    %c0_4 = arith.constant 0 : index
    %c0_5 = arith.constant 0 : index
    %7 = vector.load %arg4[%c0_4, %c0_5] : memref<1x64xf32, #tpu.memory_space<vmem>>, vector<1x64xf32>
    %8 = vector.broadcast %7 : vector<1x64xf32> to vector<16x64xf32>
    %9 = arith.addf %6, %8 : vector<16x64xf32>
    %cst_6 = arith.constant 0.000000e+00 : f32
    %10 = vector.broadcast %cst_6 : f32 to vector<16x64xf32>
    %11 = arith.maximumf %9, %10 : vector<16x64xf32>
    %c0_7 = arith.constant 0 : index
    %c0_8 = arith.constant 0 : index
    %12 = vector.load %arg15[%c0_7, %c0_8] : memref<16x32xf32, #tpu.memory_space<vmem>>, vector<16x32xf32>
    %13 = arith.truncf %11 : vector<16x64xf32> to vector<16x64xbf16>
    %c0_9 = arith.constant 0 : index
    %c0_10 = arith.constant 0 : index
    %14 = vector.load %arg5[%c0_9, %c0_10] : memref<64x32xbf16, #tpu.memory_space<vmem>>, vector<64x32xbf16>
    %cst_11 = arith.constant dense<0.000000e+00> : vector<16x32xf32>
    %15 = tpu.matmul %13, %14, %cst_11 {dimension_numbers = #tpu.dot_dimension_numbers<[1], [0], [0], [1], [0, 0, 1, 1], [], []>} : vector<16x64xbf16>, vector<64x32xbf16>, vector<16x32xf32> -> vector<16x32xf32>
    %16 = arith.addf %12, %15 : vector<16x32xf32>
    %c0_12 = arith.constant 0 : index
    %c0_13 = arith.constant 0 : index
    %17 = vector.load %arg15[%c0_12, %c0_13] : memref<16x32xf32, #tpu.memory_space<vmem>>, vector<16x32xf32>
    tpu.vector_store %arg15[%c0_12, %c0_13], %16 {strides = array<i32>} : memref<16x32xf32, #tpu.memory_space<vmem>>, vector<16x32xf32>,
    %c0_i32_14 = arith.constant 0 : i32
    %18 = arith.cmpi eq, %arg1, %c0_i32_14 : i32
    %19 = arith.extui %18 : i1 to i32
    %c0_i32_15 = arith.constant 0 : i32
    %20 = arith.cmpi ne, %19, %c0_i32_15 : i32
    scf.if %20 {
      %c0_16 = arith.constant 0 : index
      %c0_17 = arith.constant 0 : index
      %21 = vector.load %arg15[%c0_16, %c0_17] : memref<16x32xf32, #tpu.memory_space<vmem>>, vector<16x32xf32>
      %c0_18 = arith.constant 0 : index
      %c0_19 = arith.constant 0 : index
      %22 = vector.load %arg6[%c0_18, %c0_19] : memref<1x32xf32, #tpu.memory_space<vmem>>, vector<1x32xf32>
      %23 = vector.broadcast %22 : vector<1x32xf32> to vector<16x32xf32>
      %24 = arith.addf %21, %23 : vector<16x32xf32>
      %25 = arith.truncf %24 : vector<16x32xf32> to vector<16x32xbf16>
      %c0_20 = arith.constant 0 : index
      %c0_21 = arith.constant 0 : index
      %26 = vector.load %arg7[%c0_20, %c0_21] : memref<32x32xbf16, #tpu.memory_space<vmem>>, vector<32x32xbf16>
      %cst_22 = arith.constant dense<0.000000e+00> : vector<16x32xf32>
      %27 = tpu.matmul %4, %26, %cst_22 {dimension_numbers = #tpu.dot_dimension_numbers<[1], [0], [0], [1], [0, 0, 1, 1], [], []>} : vector<16x32xbf16>, vector<32x32xbf16>, vector<16x32xf32> -> vector<16x32xf32>
      %c0_23 = arith.constant 0 : index
      %c0_24 = arith.constant 0 : index
      %28 = vector.load %arg8[%c0_23, %c0_24] : memref<1x32xf32, #tpu.memory_space<vmem>>, vector<1x32xf32>
      %29 = vector.broadcast %28 : vector<1x32xf32> to vector<16x32xf32>
      %30 = arith.addf %27, %29 : vector<16x32xf32>
      %c0_25 = arith.constant 0 : index
      %c0_26 = arith.constant 0 : index
      %31 = vector.load %arg9[%c0_25, %c0_26] : memref<32x32xbf16, #tpu.memory_space<vmem>>, vector<32x32xbf16>
      %cst_27 = arith.constant dense<0.000000e+00> : vector<16x32xf32>
      %32 = tpu.matmul %25, %31, %cst_27 {dimension_numbers = #tpu.dot_dimension_numbers<[1], [0], [0], [1], [0, 0, 1, 1], [], []>} : vector<16x32xbf16>, vector<32x32xbf16>, vector<16x32xf32> -> vector<16x32xf32>
      %33 = arith.addf %30, %32 : vector<16x32xf32>
      %c0_28 = arith.constant 0 : index
      %c0_29 = arith.constant 0 : index
      %34 = vector.load %arg10[%c0_28, %c0_29] : memref<1x32xf32, #tpu.memory_space<vmem>>, vector<1x32xf32>
      %35 = vector.broadcast %34 : vector<1x32xf32> to vector<16x32xf32>
      %36 = arith.addf %33, %35 : vector<16x32xf32>
      %37 = arith.negf %36 : vector<16x32xf32>
      %38 = math.exp %37 : vector<16x32xf32>
      %cst_30 = arith.constant 1.000000e+00 : f32
      %39 = vector.broadcast %cst_30 : f32 to vector<16x32xf32>
      %40 = arith.addf %39, %38 : vector<16x32xf32>
      %41 = arith.divf %39, %40 : vector<16x32xf32>
      %c0_31 = arith.constant 0 : index
      %c0_32 = arith.constant 0 : index
      %42 = vector.load %arg13[%c0_31, %c0_32] : memref<1x32xf32, #tpu.memory_space<vmem>>, vector<1x32xf32>
      %43 = vector.broadcast %42 : vector<1x32xf32> to vector<16x32xf32>
      %44 = arith.subf %36, %43 : vector<16x32xf32>
      %45 = arith.negf %44 : vector<16x32xf32>
      %46 = math.exp %45 : vector<16x32xf32>
      %cst_33 = arith.constant 1.000000e+00 : f32
      %47 = vector.broadcast %cst_33 : f32 to vector<16x32xf32>
      %48 = arith.addf %47, %46 : vector<16x32xf32>
      %49 = arith.divf %47, %48 : vector<16x32xf32>
      %50 = arith.mulf %41, %3 : vector<16x32xf32>
      %51 = arith.addf %50, %24 : vector<16x32xf32>
      %52 = arith.truncf %51 : vector<16x32xf32> to vector<16x32xbf16>
      %c0_34 = arith.constant 0 : index
      %c0_35 = arith.constant 0 : index
      %53 = vector.load %arg11[%c0_34, %c0_35] : memref<32x32xbf16, #tpu.memory_space<vmem>>, vector<32x32xbf16>
      %cst_36 = arith.constant dense<0.000000e+00> : vector<16x32xf32>
      %54 = tpu.matmul %52, %53, %cst_36 {dimension_numbers = #tpu.dot_dimension_numbers<[1], [0], [0], [1], [0, 0, 1, 1], [], []>} : vector<16x32xbf16>, vector<32x32xbf16>, vector<16x32xf32> -> vector<16x32xf32>
      %c0_37 = arith.constant 0 : index
      %c0_38 = arith.constant 0 : index
      %55 = vector.load %arg12[%c0_37, %c0_38] : memref<1x32xf32, #tpu.memory_space<vmem>>, vector<1x32xf32>
      %56 = vector.broadcast %55 : vector<1x32xf32> to vector<16x32xf32>
      %57 = arith.addf %54, %56 : vector<16x32xf32>
      %58 = math.tanh %57 : vector<16x32xf32>
      %cst_39 = arith.constant 1.000000e+00 : f32
      %59 = vector.broadcast %cst_39 : f32 to vector<16x32xf32>
      %60 = arith.subf %59, %49 : vector<16x32xf32>
      %61 = arith.mulf %60, %3 : vector<16x32xf32>
      %62 = arith.mulf %49, %58 : vector<16x32xf32>
      %63 = arith.addf %61, %62 : vector<16x32xf32>
      %c0_40 = arith.constant 0 : index
      %c0_41 = arith.constant 0 : index
      %64 = vector.load %arg14[%c0_40, %c0_41] : memref<16x32xf32, #tpu.memory_space<vmem>>, vector<16x32xf32>
      tpu.vector_store %arg14[%c0_40, %c0_41], %63 {strides = array<i32>} : memref<16x32xf32, #tpu.memory_space<vmem>>, vector<16x32xf32>,
    } else {
    }
    return
  }
  func.func @transform_0(%arg0: i32, %arg1: i32) -> (i32, i32) {
    %c0_i32 = arith.constant 0 : i32
    %c0_i32_0 = arith.constant 0 : i32
    return %arg0, %c0_i32 : i32, i32
  }
  func.func @transform_1(%arg0: i32, %arg1: i32) -> (i32, i32) {
    %c0_i32 = arith.constant 0 : i32
    %c0_i32_0 = arith.constant 0 : i32
    return %c0_i32, %arg1 : i32, i32
  }
  func.func @transform_2(%arg0: i32, %arg1: i32) -> (i32, i32) {
    %c0_i32 = arith.constant 0 : i32
    %c0_i32_0 = arith.constant 0 : i32
    return %c0_i32, %arg1 : i32, i32
  }
  func.func @transform_3(%arg0: i32, %arg1: i32) -> (i32, i32) {
    %c0_i32 = arith.constant 0 : i32
    %c0_i32_0 = arith.constant 0 : i32
    return %arg1, %c0_i32 : i32, i32
  }
  func.func @transform_4(%arg0: i32, %arg1: i32) -> (i32, i32) {
    %c0_i32 = arith.constant 0 : i32
    %c0_i32_0 = arith.constant 0 : i32
    %c0_i32_1 = arith.constant 0 : i32
    return %c0_i32, %c0_i32_0 : i32, i32
  }
  func.func @transform_5(%arg0: i32, %arg1: i32) -> (i32, i32) {
    %c0_i32 = arith.constant 0 : i32
    %c0_i32_0 = arith.constant 0 : i32
    %c0_i32_1 = arith.constant 0 : i32
    return %c0_i32, %c0_i32_0 : i32, i32
  }
  func.func @transform_6(%arg0: i32, %arg1: i32) -> (i32, i32) {
    %c0_i32 = arith.constant 0 : i32
    %c0_i32_0 = arith.constant 0 : i32
    %c0_i32_1 = arith.constant 0 : i32
    return %c0_i32, %c0_i32_0 : i32, i32
  }
  func.func @transform_7(%arg0: i32, %arg1: i32) -> (i32, i32) {
    %c0_i32 = arith.constant 0 : i32
    %c0_i32_0 = arith.constant 0 : i32
    %c0_i32_1 = arith.constant 0 : i32
    return %c0_i32, %c0_i32_0 : i32, i32
  }
  func.func @transform_8(%arg0: i32, %arg1: i32) -> (i32, i32) {
    %c0_i32 = arith.constant 0 : i32
    %c0_i32_0 = arith.constant 0 : i32
    %c0_i32_1 = arith.constant 0 : i32
    return %c0_i32, %c0_i32_0 : i32, i32
  }
  func.func @transform_9(%arg0: i32, %arg1: i32) -> (i32, i32) {
    %c0_i32 = arith.constant 0 : i32
    %c0_i32_0 = arith.constant 0 : i32
    %c0_i32_1 = arith.constant 0 : i32
    return %c0_i32, %c0_i32_0 : i32, i32
  }
  func.func @transform_10(%arg0: i32, %arg1: i32) -> (i32, i32) {
    %c0_i32 = arith.constant 0 : i32
    %c0_i32_0 = arith.constant 0 : i32
    %c0_i32_1 = arith.constant 0 : i32
    return %c0_i32, %c0_i32_0 : i32, i32
  }
  func.func @transform_11(%arg0: i32, %arg1: i32) -> (i32, i32) {
    %c0_i32 = arith.constant 0 : i32
    %c0_i32_0 = arith.constant 0 : i32
    %c0_i32_1 = arith.constant 0 : i32
    return %c0_i32, %c0_i32_0 : i32, i32
  }
  func.func @transform_12(%arg0: i32, %arg1: i32) -> (i32, i32) {
    %c0_i32 = arith.constant 0 : i32
    %c0_i32_0 = arith.constant 0 : i32
    return %arg0, %c0_i32 : i32, i32
  }
}

</mosaic_0001>

<bundles_post_ra>
// kernel: gated_trxl_layer.3
= control target key start
LH: loop header
LB: loop body
LE: loop exit
PB: predicated region body
PF: predicated region fallthrough
CT: control target
= control target key end

     0   :  { %v639_v1 = vmov 0.0   ;;  %vm640_vm0 = vmmov 0   ;;  %vm47_vm1 = vcmask 261120   ;;  %s825_s0 = inlined_call_operand.vmem [shape: f32[16,32], index: 0, kind: input, shape index: {}]   ;;  %s826_s1 = inlined_call_operand.vmem [shape: bf16[32,64], index: 1, kind: input, shape index: {}]   ;;  %s827_s2 = inlined_call_operand.vmem [shape: f32[1,64], index: 2, kind: input, shape index: {}]   ;;  %s828_s3 = inlined_call_operand.vmem [shape: bf16[64,32], index: 3, kind: input, shape index: {}]   ;;  %s829_s4 = inlined_call_operand.vmem [shape: f32[1,32], index: 4, kind: input, shape index: {}]   ;;  %s830_s5 = inlined_call_operand.vmem [shape: bf16[32,32], index: 5, kind: input, shape index: {}]   ;;  %s831_s6 = inlined_call_operand.vmem [shape: f32[1,32], index: 6, kind: input, shape index: {}]   ;;  %s832_s7 = inlined_call_operand.vmem [shape: bf16[32,32], index: 7, kind: input, shape index: {}]   ;;  %s833_s8 = inlined_call_operand.vmem [shape: f32[1,32], index: 8, kind: input, shape index: {}]   ;;  %s834_s9 = inlined_call_operand.vmem [shape: bf16[32,32], index: 9, kind: input, shape index: {}]   ;;  %s835_s10 = inlined_call_operand.vmem [shape: f32[1,32], index: 10, kind: input, shape index: {}]   ;;  %s836_s11 = inlined_call_operand.vmem [shape: f32[1,32], index: 11, kind: input, shape index: {}]   ;;  %s837_s12 = inlined_call_operand.hbm [shape: f32[16,32], index: 12, kind: output, shape index: {}]  }
   0x1   :  { %v583_v0 = vld [vmem:[%s826_s1] sm:$0xff]   ;;  %534 = vmatprep.subr.bf16.mxu0 %v639_v1  ;;  %v584_v2 = vld [vmem:[%s826_s1 + $0x8] sm:$0xff]   ;;  %542 = vmatprep.subr.bf16.mxu1 %v639_v1  ;;  %48 = vst.msk [vmem:[#allocation2] sm:$0xff] %vm47_vm1, %v639_v1  ;;  %49 = vst.msk [vmem:[#allocation2 + $0x8] sm:$0xff] %vm47_vm1, %v639_v1 }
   0x2   :  { %535 = vmatpush3.bf16.msra.mxu0 %v583_v0  ;;  %538 = vmatprep.mubr.msk.bf16.mxu0 %vm640_vm0, %v639_v1  ;;  %v722_v3 = vld [vmem:[%s825_s0] sm:$0xff]  ;;  %v727_v4 = vld [vmem:[%s825_s0 + $0x8] sm:$0xff] }
   0x3   :  { %536 = vmatprep.subr.bf16.mxu0 %v639_v1  ;;  %v585_v5 = vld [vmem:[%s828_s3] sm:$0xff]   ;;  %550 = vmatprep.mubr.msk.bf16.mxu1 %vm640_vm0, %v639_v1  ;;  %v586_v6 = vld [vmem:[%s828_s3 + $0x8] sm:$0xff]   ;;  %v52_v7 = vpack.c.bf16 %v727_v4, %v722_v3 }
   0x4   :  { %543 = vmatpush3.bf16.msra.mxu1 %v585_v5 }
   0x5   :  { %544 = vmatprep.subr.bf16.mxu1 %v639_v1 }
   0x6   :  { %537 = vmatpush3.bf16.msra.mxu0 %v584_v2 }
   0x7   :  { %554 = vmatprep.subr.bf16.mxu0 %v639_v1 }
   0x8   :  { %545 = vmatpush3.bf16.msra.mxu1 %v586_v6 }
   0x9   :  { %539 = vmatmul.mubr.msk.bf16.vlgmr.msra.gmra.mrb[0].mxu0 %vm47_vm1, %v52_v7  ;;  %546 = vmatprep.subr.bf16.mxu1 %v639_v1 }
   0xa   :  { %558 = vmatprep.mubr.msk.bf16.mxu0 %vm640_vm0, %v639_v1 }
   0xb   :  { %17 = vsyncpa [#allocation4], 0  ;;  %v587_v8 = vld [vmem:[%s828_s3 + $0x10] sm:$0xff]   ;;  %v588_v9 = vld [vmem:[%s828_s3 + $0x18] sm:$0xff]   ;;  %vm158_vm2 = vcmask 523264  }
   0xc   :  { %547 = vmatpush3.bf16.msra.mxu1 %v587_v8  ;;  %v589_v10 = vld [vmem:[%s830_s5] sm:$0xff]   ;;  %v590_v21 = vld [vmem:[%s830_s5 + $0x8] sm:$0xff]  }
   0xd   :  { %548 = vmatprep.subr.bf16.mxu1 %v639_v1  ;;  %555 = vmatpush3.bf16.msra.mxu0 %v589_v10  ;;  %v490_v11 = vld [vmem:[%s827_s2] ss:$0 sm:$0xff]  ;;  %v592_v23 = vld [vmem:[%s832_s7 + $0x8] sm:$0xff]  }
   0xe   :  { %556 = vmatprep.subr.bf16.mxu0 %v639_v1  ;;  %v591_v22 = vld [vmem:[%s832_s7] sm:$0xff]   ;;  %v124_v26 = vld [vmem:[#allocation2 + $0x8] sm:$0xff] }
   0xf   :  { %v123_v24 = vld [vmem:[#allocation2] sm:$0xff]  ;;  %v594_v43 = vld [vmem:[%s834_s9 + $0x8] sm:$0xff]  }
  0x10   :  { %549 = vmatpush3.bf16.msra.mxu1 %v588_v9  ;;  %v499_v33 = vld [vmem:[%s829_s4] ss:$0 sm:$0xff] }
  0x11   :  { %570 = vmatprep.subr.bf16.mxu1 %v639_v1  ;;  %557 = vmatpush3.bf16.msra.mxu0 %v590_v21  ;;  %v593_v42 = vld [vmem:[%s834_s9] sm:$0xff]  }
  0x12   :  { %562 = vmatprep.subr.bf16.mxu0 %v639_v1  ;;  %v500_v44 = vld [vmem:[%s831_s6] ss:$0 sm:$0xff] }
  0x13   :  { %v507_v47 = vld [vmem:[%s833_s8] ss:$0 sm:$0xff] }
  0x14   :  { %559 = vmatmul.mubr.msk.bf16.vlgmr.msra.gmra.mrb[4].mxu0 %vm47_vm1, %v52_v7  ;;  %v510_v7 = vld [vmem:[%s836_s11] ss:$0 sm:$0xff]  ;;  %s641_s11 = smov [#allocation3]  }
  0x15   :  { %563 = vmatpush3.bf16.msra.mxu0 %v591_v22  ;;  %566 = vmatprep.mubr.msk.bf16.mxu0 %vm640_vm0, %v639_v1  ;;  %s479_s0 = sshll.u32 %s641_s11, 4  ;;  %s480_s0 = int_to_ptr.vmem [resolvable:$true] %s479_s0 }
  0x16   :  { %564 = vmatprep.subr.bf16.mxu0 %v639_v1  ;;  %p620_p1 = scmp.lt.s32.totalorder %s480_s0, %s480_s0 }
  0x19   :  { %565 = vmatpush3.bf16.msra.mxu0 %v592_v23 }
  0xdc   :  { %v114_v12 = vpop.f32.mrb[0].mxu0 }
  0xdd   :  { %v115_v13 = vadd.f32 %v490_v11, %v114_v12  ;;  %v540_v14 = vpop.f32.mrb[1].mxu0 }
  0xde   :  { %v117_v15 = vpop.f32.mrb[2].mxu0 }
  0xdf   :  { %v118_v16 = vadd.f32 %v490_v11, %v117_v15  ;;  %v541_v17 = vpop.f32.mrb[3].mxu0  ;;  %v121_v18 = vmax.f32 %v115_v13, 0.0 }
  0xe1   :  { %v122_v19 = vmax.f32 %v118_v16, 0.0  ;;  %v513_v16 = vld [vmem:[%s835_s10] ss:$0 sm:$0xff]  ;;  %s615_s10 = scalar_lea.vmem %s480_s0, 256 }
  0xe2   :  { %p616_p0 = scmp.ne.s32.totalorder %s480_s0, %s615_s10  ;;  %p621_p2 = scmp.lt.s32.totalorder %s615_s10, %s615_s10 }
  0xe3   :  { %v125_v20 = vpack.c.bf16 %v122_v19, %v121_v18 }
  0xe4   :  { %p622_p3 = por %p621_p2, %p620_p1 }
  0xe5   :  { %551 = vmatmul.mubr.msk.bf16.vlgmr.msra.gmra.mrb[0].mxu1 %vm158_vm2, %v125_v20 }
  0xe6   :  { %574 = vmatprep.mubr.msk.bf16.mxu1 %vm640_vm0, %v639_v1  ;;  %571 = vmatpush3.bf16.msra.mxu1 %v593_v42  ;;  %p623_p4 = pnand %p622_p3, %p616_p0 }
  0xe7   :  { %v279_v38 = vpop.f32.mrb[4].mxu0  ;;  %572 = vmatprep.subr.bf16.mxu1 %v639_v1 }
  0xe8   :  { %v560_v39 = vpop.f32.mrb[5].mxu0  ;;  %v280_v45 = vadd.f32 %v500_v44, %v279_v38 }
  0xe9   :  { %v282_v40 = vpop.f32.mrb[6].mxu0 }
  0xea   :  { %v561_v41 = vpop.f32.mrb[7].mxu0  ;;  %573 = vmatpush3.bf16.msra.mxu1 %v594_v43  ;;  %v283_v48 = vadd.f32 %v500_v44, %v282_v40 }
 0x1b8   :  { %v196_v25 = vpop.f32.mrb[0].mxu1 }
 0x1b9   :  { %v203_v27 = vadd.f32 %v196_v25, %v123_v24  ;;  %v552_v28 = vpop.f32.mrb[1].mxu1 }
 0x1ba   :  { %v199_v29 = vpop.f32.mrb[2].mxu1 }
 0x1bb   :  { %205 = vst.msk [vmem:[#allocation2] sm:$0xff] %vm47_vm1, %v203_v27  ;;  %v204_v30 = vadd.f32 %v199_v29, %v124_v26  ;;  %v553_v31 = vpop.f32.mrb[3].mxu1 }
 0x1bd   :  { %206 = vst.msk [vmem:[#allocation2 + $0x8] sm:$0xff] %vm47_vm1, %v204_v30 }
 0x1c2   :  { %v210_v32 = vld [vmem:[#allocation2] sm:$0xff] }
 0x1c3   :  { %v219_v35 = vadd.f32 %v499_v33, %v210_v32 }
 0x1c4   :  { %v211_v34 = vld [vmem:[#allocation2 + $0x8] sm:$0xff] }
 0x1c5   :  { %v220_v36 = vadd.f32 %v499_v33, %v211_v34 }
 0x1c7   :  { %v221_v37 = vpack.c.bf16 %v220_v36, %v219_v35 }
 0x1c9   :  { %567 = vmatmul.mubr.msk.bf16.vlgmr.msra.gmra.mrb[8].mxu0 %vm47_vm1, %v221_v37 }
 0x29c   :  { %v339_v46 = vpop.f32.mrb[8].mxu0 }
 0x29d   :  { %v346_v49 = vadd.f32 %v339_v46, %v280_v45  ;;  %v568_v50 = vpop.f32.mrb[9].mxu0 }
 0x29e   :  { %v342_v51 = vpop.f32.mrb[10].mxu0 }
 0x29f   :  { %v355_v52 = vadd.f32 %v507_v47, %v346_v49  ;;  %v347_v53 = vadd.f32 %v342_v51, %v283_v48  ;;  %v569_v54 = vpop.f32.mrb[11].mxu0 }
 0x2a1   :  { %v508_v55 = vmul.f32 -1.442695, %v355_v52  ;;  %v356_v56 = vadd.f32 %v507_v47, %v347_v53  ;;  %v376_v8 = vsub.f32 %v355_v52, %v510_v7 }
 0x2a3   :  { %595 = vpow2.f32 %v508_v55  ;;  %v509_v57 = vmul.f32 -1.442695, %v356_v56  ;;  %v377_v9 = vsub.f32 %v356_v56, %v510_v7  ;;  %v511_v10 = vmul.f32 -1.442695, %v376_v8 }
 0x2a5   :  { %597 = vpow2.f32 %v509_v57  ;;  %v512_v11 = vmul.f32 -1.442695, %v377_v9 }
 0x2ad   :  { %v596_v58 = vpop.eup %595 }
 0x2ae   :  { %v363_v59 = vadd.f32 1.0, %v596_v58 }
 0x2af   :  { %v598_v60 = vpop.eup %597 }
 0x2b0   :  { %599 = vrcp.f32 %v363_v59  ;;  %v364_v61 = vadd.f32 1.0, %v598_v60 }
 0x2b2   :  { %601 = vrcp.f32 %v364_v61 }
 0x2b3   :  { %603 = vpow2.f32 %v511_v10 }
 0x2b4   :  { %605 = vpow2.f32 %v512_v11 }
 0x2ba   :  { %v600_v62 = vpop.eup %599 }
 0x2bb   :  { %v390_v63 = vmul.f32 %v600_v62, %v722_v3 }
 0x2bc   :  { %v602_v0 = vpop.eup %601 }
 0x2bd   :  { %v391_v1 = vmul.f32 %v602_v0, %v727_v4  ;;  %v392_v2 = vadd.f32 %v390_v63, %v219_v35  ;;  %v604_v12 = vpop.eup %603 }
 0x2be   :  { %v606_v13 = vpop.eup %605  ;;  %v384_v14 = vadd.f32 1.0, %v604_v12 }
 0x2bf   :  { %v393_v5 = vadd.f32 %v391_v1, %v220_v36  ;;  %v385_v15 = vadd.f32 1.0, %v606_v13 }
 0x2c0   :  { %607 = vrcp.f32 %v384_v14 }
 0x2c1   :  { %v394_v6 = vpack.c.bf16 %v393_v5, %v392_v2  ;;  %609 = vrcp.f32 %v385_v15 }
 0x2c3   :  { %575 = vmatmul.mubr.msk.bf16.vlgmr.msra.gmra.mrb[4].mxu1 %vm47_vm1, %v394_v6 }
 0x2ca   :  { %v608_v23 = vpop.eup %607 }
 0x2cb   :  { %v610_v24 = vpop.eup %609  ;;  %v464_v25 = vsub.f32 1.0, %v608_v23 }
 0x2cc   :  { %v465_v26 = vsub.f32 1.0, %v610_v24 }
 0x2cd   :  { %v466_v29 = vmul.f32 %v464_v25, %v722_v3 }
 0x2ce   :  { %v467_v32 = vmul.f32 %v465_v26, %v727_v4 }
 0x396   :  { %v455_v17 = vpop.f32.mrb[4].mxu1 }
 0x397   :  { %v456_v18 = vadd.f32 %v513_v16, %v455_v17  ;;  %v576_v19 = vpop.f32.mrb[5].mxu1 }
 0x398   :  { %v458_v20 = vpop.f32.mrb[6].mxu1 }
 0x399   :  { %611 = vtanh.f32 %v456_v18  ;;  %v459_v21 = vadd.f32 %v513_v16, %v458_v20  ;;  %v577_v22 = vpop.f32.mrb[7].mxu1 }
 0x39b   :  { %613 = vtanh.f32 %v459_v21 }
 0x3a3   :  { %v612_v27 = vpop.eup %611 }
 0x3a4   :  { %v468_v28 = vmul.f32 %v612_v27, %v608_v23 }
 0x3a5   :  { %v614_v30 = vpop.eup %613 }
 0x3a6   :  { %v469_v31 = vmul.f32 %v614_v30, %v610_v24  ;;  %v470_v33 = vadd.f32 %v468_v28, %v466_v29 }
 0x3a8   :  { %v471_v34 = vadd.f32 %v469_v31, %v467_v32  ;;  %472 = vst.msk [vmem:[#allocation3] sm:$0xff] %vm47_vm1, %v470_v33 }
 0x3aa   :  { %473 = vst.msk [vmem:[#allocation3 + $0x8] sm:$0xff] %vm47_vm1, %v471_v34 }
 0x3ab   :  { %626 = shalt.err (!%p623_p4)
}
 0x3ac   :  { %s627_s16 = scalar_lea.hbm %s837_s12, 256 }
 0x3ad   :  { %p628_p5 = scmp.ne.s32.totalorder %s837_s12, %s627_s16  ;;  %p631_p6 = scmp.lt.u32.totalorder %s627_s16, %s837_s12 }
 0x3af   :  { %p633_p7 = pnand %p631_p6, %p628_p5 }
 0x3b1   :  { %636 = shalt.err (!%p633_p7)
}
 0x3b2   :  { %s642_s3 = smov 128   ;;  %s643_s21 = smov 8  }
 0x3b3   :  { %485 = dma.vmem_to_hbm [thread:$0]  %s480_s0, 256, %s837_s12, [#allocation4], %s642_s3, %s642_s3, %s643_s21  }
 0x3b4   :  { %637 = dma.done.wait [#allocation4], 256  }
 0x3b5   :  { %638 = vsyncadd [#allocation4], 4294967040 }
 0x3b6   :  { %489 = vsyncpa [#allocation4], 1 }

// kernel: gated_trxl_layer.2
= control target key start
LH: loop header
LB: loop body
LE: loop exit
PB: predicated region body
PF: predicated region fallthrough
CT: control target
= control target key end

     0   :  { %s2740_s0 = inlined_call_operand.vmem [shape: f32[8,2,1,32], index: 0, kind: input, shape index: {}]   ;;  %s2741_s1 = inlined_call_operand.vmem [shape: bf16[32,32], index: 1, kind: input, shape index: {}]   ;;  %s2742_s2 = inlined_call_operand.vmem [shape: f32[1,32], index: 2, kind: input, shape index: {}]   ;;  %s2743_s3 = inlined_call_operand.vmem [shape: bf16[32,32], index: 3, kind: input, shape index: {}]   ;;  %s2744_s4 = inlined_call_operand.vmem [shape: f32[1,32], index: 4, kind: input, shape index: {}]   ;;  %s2745_s5 = inlined_call_operand.vmem [shape: bf16[32,32], index: 5, kind: input, shape index: {}]   ;;  %s2746_s6 = inlined_call_operand.vmem [shape: f32[1,32], index: 6, kind: input, shape index: {}]   ;;  %s2747_s7 = inlined_call_operand.vmem [shape: bf16[4,8,32], index: 7, kind: input, shape index: {}]   ;;  %s2748_s8 = inlined_call_operand.vmem [shape: f32[1,32], index: 8, kind: input, shape index: {}]   ;;  %s2749_s9 = inlined_call_operand.vmem [shape: bf16[32,32], index: 9, kind: input, shape index: {}]   ;;  %s2750_s10 = inlined_call_operand.vmem [shape: f32[1,32], index: 10, kind: input, shape index: {}]   ;;  %s2751_s11 = inlined_call_operand.vmem [shape: bf16[32,32], index: 11, kind: input, shape index: {}]   ;;  %s2752_s12 = inlined_call_operand.vmem [shape: f32[1,32], index: 12, kind: input, shape index: {}]   ;;  %s2753_s13 = inlined_call_operand.vmem [shape: bf16[32,32], index: 13, kind: input, shape index: {}]   ;;  %s2754_s14 = inlined_call_operand.vmem [shape: f32[1,32], index: 14, kind: input, shape index: {}]   ;;  %s2755_s15 = inlined_call_operand.vmem [shape: f32[1,32], index: 15, kind: input, shape index: {}]   ;;  %s2756_s16 = inlined_call_operand.vmem [shape: f32[8,2,1,32], index: 16, kind: output, shape index: {}]  }
   0x1   :  { %2757 = sst [smem:[#allocation4_spill]] %s2740_s0 }
   0x2   :  { %s2426_s21 = smov 0   ;;  %s2428_s22 = smov 0  }
   0x3   :  { %s2430_s23 = smov 0  }
   0x4 LB: > { %s2029_s24 = sadd.s32 4294967295, %s2333_s23   ;;  %s2443_s25 = sadd.s32 1, %s2333_s23   ;;  %s2333_s23 = sphi %s2430_s23, %s2762_s23   ;;  %s2329_s22 = sphi %s2428_s22, %s2761_s22   ;;  %s2325_s21 = sphi %s2426_s21, %s2760_s21  }
   0x5   : > { %s30_s26 = ssub.s32 %s2333_s23, %s2443_s25  ;;  %s33_s27 = sadd.s32 1, %s2329_s22 }
   0x6   : > { %p31_p0 = scmp.eq.s32.totalorder %s30_s26, 0  ;;  %p40_p1 = scmp.ne.s32.totalorder %s2329_s22, %s2325_s21 }
   0x7   : > { %p41_p2 = scmp.eq.s32.totalorder %s2333_s23, 0  ;;  %p385_p3 = scmp.eq.s32.totalorder %s2029_s24, 1 }
   0x8   : > { %s2454_s28 = scalar_select %p31_p0, %s2329_s22, %s33_s27  }
   0x9   : > { %p42_p4 = por %p41_p2, %p40_p1  ;;  %p2456_p5 = por %p385_p3, %p40_p1 }
   0xa   : > { %p2032_p6 = scmp.ge.s32.totalorder %s2333_s23, 2 }
   0xc   : > { %452 = sbr.rel (%p2032_p6) target bundleno = 33 (0x21), region = 76 }
  0x13   : > { %455 = sbr.rel (!%p42_p4) target bundleno = 33 (0x21), region = 80  ;;  %s457_s30 = sand.u32 (%p42_p4), 1, %s2329_s22  }
  0x14   : > { %s2759_s18 = sld [smem:[#allocation4_spill]] (%p42_p4)  ;;  %s2033_s20 = sshll.u32 (%p42_p4), %s457_s30, 3 }
  0x15   : > { %s459_s26 = scalar_lea.vmem (%p42_p4), [#allocation2], %s2033_s20 }
  0x1a   : > { %s460_s19 = scalar_lea.vmem %s2759_s18, %s2333_s23 }
  0x1b   : > { %v476_v0 = vld [vmem:[%s460_s19] sm:$0x1]  ;;  %v478_v1 = vld [vmem:[%s460_s19 + $0x2] sm:$0x1]  ;;  %v480_v2 = vld [vmem:[%s460_s19 + $0x4] sm:$0x1] }
  0x1c   : > { %v482_v3 = vld [vmem:[%s460_s19 + $0x6] sm:$0x1]  ;;  %477 = vst [vmem:[%s459_s26] sm:$0x1] %v476_v0  ;;  %479 = vst [vmem:[%s459_s26 + $0x1] sm:$0x1] %v478_v1 }
  0x1d   : > { %481 = vst [vmem:[%s459_s26 + $0x2] sm:$0x1] %v480_v2  ;;  %483 = vst [vmem:[%s459_s26 + $0x3] sm:$0x1] %v482_v3  ;;  %v484_v4 = vld [vmem:[%s460_s19 + $0x8] sm:$0x1] }
  0x1e   : > { %v486_v5 = vld [vmem:[%s460_s19 + $0xa] sm:$0x1]  ;;  %v488_v6 = vld [vmem:[%s460_s19 + $0xc] sm:$0x1]  ;;  %485 = vst [vmem:[%s459_s26 + $0x4] sm:$0x1] %v484_v4 }
  0x1f   : > { %487 = vst [vmem:[%s459_s26 + $0x5] sm:$0x1] %v486_v5  ;;  %489 = vst [vmem:[%s459_s26 + $0x6] sm:$0x1] %v488_v6  ;;  %v490_v7 = vld [vmem:[%s460_s19 + $0xe] sm:$0x1] }
  0x20   : > { %491 = vst [vmem:[%s459_s26 + $0x7] sm:$0x1] %v490_v7 }
  0x21 PF: > { %p2034_p7 = scmp.ge.s32.totalorder %s2333_s23, 1  ;;  %p529_p8 = scmp.lt.s32.totalorder %s2333_s23, 3 }
  0x23   : > { %p530_p9 = pnand %p2034_p7, %p529_p8 }
  0x24   : > { %v2273_v8 = vld [vmem:[%s2743_s3] sm:$0xff] (!%p530_p9)   ;;  %v1716_v9 = vlaneseq (!%p530_p9)  ;;  %v2335_v10 = vmov (!%p530_p9), 0.0   ;;  %v2274_v11 = vld [vmem:[%s2743_s3 + $0x8] sm:$0xff] (!%p530_p9)   ;;  %vm2336_vm0 = vmmov (!%p530_p9), 0   ;;  %s536_s18 = sand.u32 (!%p530_p9), 1, %s2325_s21   ;;  %vm629_vm1 = vcmask (!%p530_p9), 1041409  }
  0x25   : > { %533 = sbr.rel (%p530_p9) target bundleno = 1959 (0x7a7), region = 121  ;;  %2130 = vmatprep.subr.bf16.mxu1 (!%p530_p9), %v2335_v10  ;;  %2122 = vmatprep.subr.bf16.mxu0 (!%p530_p9), %v2335_v10  ;;  %v2275_v12 = vld [vmem:[%s2741_s1] sm:$0xff] (!%p530_p9)   ;;  %s2483_s26 = sshll.u32 (!%p530_p9), %s536_s18, 3  ;;  %vm632_vm2 = vcmask (!%p530_p9), 1042434   ;;  %vm635_vm3 = vcmask (!%p530_p9), 1043459   ;;  %vm638_vm4 = vcmask (!%p530_p9), 1044484  }
  0x26   : > { %2131 = vmatpush3.bf16.msra.mxu1 (!%p530_p9), %v2273_v8  ;;  %2134 = vmatprep.mubr.msk.bf16.mxu1 (!%p530_p9), %vm2336_vm0, %v2335_v10  ;;  %v1717_v13 = vshrl.u32 (!%p530_p9), %v1716_v9, 7  ;;  %v2276_v14 = vld [vmem:[%s2741_s1 + $0x8] sm:$0xff] (!%p530_p9)   ;;  %s538_s30 = scalar_lea.vmem (!%p530_p9), [#allocation2], %s2483_s26  ;;  %vm641_vm5 = vcmask (!%p530_p9), 1045509   ;;  %vm644_vm6 = vcmask (!%p530_p9), 1046534   ;;  %vm647_vm7 = vcmask (!%p530_p9), 1047559  }
  0x27   : > { %2132 = vmatprep.subr.bf16.mxu1 (!%p530_p9), %v2335_v10  ;;  %2126 = vmatprep.mubr.msk.bf16.mxu0 (!%p530_p9), %vm2336_vm0, %v2335_v10  ;;  %v2491_v15 = vld [vmem:[%s538_s30] sm:$0x1] (!%p530_p9)  ;;  %v2493_v16 = vld [vmem:[%s538_s30 + $0x1] sm:$0x1] (!%p530_p9)  ;;  %v2495_v17 = vld [vmem:[%s538_s30 + $0x2] sm:$0x1] (!%p530_p9) }
  0x28   : > { %2123 = vmatpush3.bf16.msra.mxu0 (!%p530_p9), %v2275_v12  ;;  %v2498_v18 = vld [vmem:[%s538_s30 + $0x3] sm:$0x1] (!%p530_p9)  ;;  %v589_v19 = vld [vmem:[%s538_s30 + $0x4] sm:$0x1] (!%p530_p9)  ;;  %v590_v20 = vld [vmem:[%s538_s30 + $0x5] sm:$0x1] (!%p530_p9)  ;;  %v593_v21 = vpack.c.bf16 (!%p530_p9), %v2491_v15, %v2491_v15  ;;  %v594_v22 = vpack.c.bf16 (!%p530_p9), %v2493_v16, %v2493_v16  ;;  %v595_v23 = vpack.c.bf16 (!%p530_p9), %v2495_v17, %v2495_v17 }
  0x29   : > { %2124 = vmatprep.subr.bf16.mxu0 (!%p530_p9), %v2335_v10  ;;  %v2337_v24 = vmov (!%p530_p9), 1966171168   ;;  %v591_v26 = vld [vmem:[%s538_s30 + $0x6] sm:$0x1] (!%p530_p9)  ;;  %v592_v27 = vld [vmem:[%s538_s30 + $0x7] sm:$0x1] (!%p530_p9)  ;;  %v596_v28 = vpack.c.bf16 (!%p530_p9), %v2498_v18, %v2498_v18  ;;  %v597_v29 = vpack.c.bf16 (!%p530_p9), %v589_v19, %v589_v19  ;;  %v598_v30 = vpack.c.bf16 (!%p530_p9), %v590_v20, %v590_v20 }
  0x2a   : > { %2133 = vmatpush3.bf16.msra.mxu1 (!%p530_p9), %v2274_v11  ;;  %v1714_v25 = vunpack.c.l.s4 (!%p530_p9), %v2337_v24  ;;  %v1710_v31 = vcombine.low (!%p530_p9), %v2495_v17, %v2498_v18  ;;  %v599_v32 = vpack.c.bf16 (!%p530_p9), %v591_v26, %v591_v26  ;;  %v600_v33 = vpack.c.bf16 (!%p530_p9), %v592_v27, %v592_v27  ;;  %v2041_v0 = vld [vmem:[%s2744_s4] ss:$0 sm:$0xff] (!%p530_p9)  ;;  %s2338_s20 = smov (!%p530_p9), 104   ;;  %s2339_s27 = smov (!%p530_p9), 120  }
  0x2b   : > { %2146 = vmatprep.subr.bf16.mxu1 (!%p530_p9), %v2335_v10  ;;  %v620_v34 = vunpack.c.l.b16 (!%p530_p9), %v593_v21  ;;  %v621_v35 = vunpack.c.l.b16 (!%p530_p9), %v594_v22  ;;  %v622_v36 = vunpack.c.l.b16 (!%p530_p9), %v595_v23  ;;  %v623_v37 = vunpack.c.l.b16 (!%p530_p9), %v596_v28  ;;  %v2037_v1 = vld [vmem:[%s2742_s2] ss:$0 sm:$0xff] (!%p530_p9)  ;;  %s2340_s21 = smov (!%p530_p9), 112   ;;  %v2278_v21 = vld [vmem:[%s2745_s5 + $0x8] sm:$0xff] (!%p530_p9)   ;;  %s583_s19 = scalar_lea.vmem (!%p530_p9), [#allocation3], %s2483_s26 }
  0x2c   : > { %2125 = vmatpush3.bf16.msra.mxu0 %v2276_v14  ;;  %v624_v38 = vunpack.c.l.b16 %v597_v29  ;;  %v625_v39 = vunpack.c.l.b16 %v598_v30  ;;  %v626_v40 = vunpack.c.l.b16 %v599_v32  ;;  %v627_v41 = vunpack.c.l.b16 %v600_v33  ;;  %v2062_v18 = vld [vmem:[%s2750_s10] ss:$0 sm:$0xff] }
  0x2d   : > { %2138 = vmatprep.subr.bf16.mxu0 %v2335_v10  ;;  %v628_v42 = vrot.slane %v621_v35, 7  ;;  %v1711_v43 = vcombine.low %v589_v19, %v590_v20  ;;  %v631_v44 = vrot.slane %v622_v36, 6  ;;  %v634_v45 = vrot.slane %v623_v37, 5  ;;  %v2277_v20 = vld [vmem:[%s2745_s5] sm:$0xff]  }
  0x2e   : > { %v637_v46 = vrot.slane %v624_v38, 4  ;;  %v640_v47 = vrot.slane %v625_v39, 3  ;;  %v643_v49 = vrot.slane %v626_v40, 2  ;;  %v646_v50 = vrot.slane %v627_v41, 1  ;;  %v2045_v41 = vld [vmem:[%s2746_s6] ss:$0 sm:$0xff] }
  0x2f   : > { %v630_v48 = vsel %vm629_vm1, %v628_v42, %v620_v34  ;;  %v1712_v51 = vcombine.low %v591_v26, %v592_v27  ;;  %v1715_v53 = vunpack.c.0.s8 %v1714_v25  ;;  %vm662_vm8 = vcmask 261120  }
  0x30   : > { %v633_v52 = vsel %vm632_vm2, %v631_v44, %v630_v48  ;;  %vm928_vm9 = vcmask 1043456   ;;  %vm924_vm10 = vcmask 64512   ;;  %vm1891_vm11 = vcmask 253952  }
  0x31   : > { %v636_v54 = vsel %vm635_vm3, %v634_v45, %v633_v52  ;;  %v2516_v56 = vsub.s32 %v1715_v53, %v1717_v13 }
  0x32   : > { %v639_v55 = vsel %vm638_vm4, %v637_v46, %v636_v54 }
  0x33   : > { %v642_v57 = vsel %vm641_vm5, %v640_v47, %v639_v55  ;;  %v2521_v59 = vrot.slane %v1711_v43, %v2516_v56  ;;  %v2524_v60 = vrot.slane %v1712_v51, %v2516_v56 }
  0x34   : > { %v645_v58 = vsel %vm644_vm6, %v643_v49, %v642_v57 }
  0x35   : > { %v648_v61 = vsel %vm647_vm7, %v646_v50, %v645_v58  ;;  %v1742_v63 = vcombine.low %v2521_v59, %v2524_v60  ;;  %v2071_v59 = vld [vmem:[%s2755_s15] ss:$0 sm:$0xff] }
  0x36   : > { %v2527_v62 = vpack.c.b16 %v648_v61, %v648_v61 }
  0x38   : > { %2135 = vmatmul.mubr.msk.bf16.vlgmr.msra.gmra.mrb[0].mxu1 %vm662_vm8, %v2527_v62  ;;  %2127 = vmatmul.mubr.msk.bf16.vlgmr.msra.gmra.mrb[0].mxu0 %vm662_vm8, %v2527_v62 }
  0x39   : > { %2148 = vmatprep.mubr.msk.bf16.mxu1 %vm2336_vm0, %v2335_v10  ;;  %2142 = vmatprep.mubr.msk.bf16.mxu0 %vm2336_vm0, %v2335_v10 }
  0x3a   : > { %2139 = vmatpush3.bf16.msra.mxu0 %v2277_v20 }
  0x3b   : > { %2140 = vmatprep.subr.bf16.mxu0 %v2335_v10 }
  0x3e   : > { %2141 = vmatpush3.bf16.msra.mxu0 %v2278_v21 }
  0x3f   : > { %2152 = vmatprep.subr.bf16.mxu0 %v2335_v10 }
  0x41   : > { %2143 = vmatmul.mubr.msk.bf16.vlgmr.msra.gmra.mrb[4].mxu0 %vm662_vm8, %v2527_v62 }
  0x42   : > { %2154 = vmatprep.mubr.msk.bf16.mxu0 %vm2336_vm0, %v2335_v10 }
 0x10b   : > { %v765_v2 = vpop.f32.mrb[0].mxu1  ;;  %v700_v3 = vpop.f32.mrb[0].mxu0 }
 0x10c   : > { %v766_v4 = vadd.f32 %v2041_v0, %v765_v2  ;;  %v2136_v5 = vpop.f32.mrb[1].mxu1  ;;  %v701_v6 = vadd.f32 %v2037_v1, %v700_v3  ;;  %v2128_v7 = vpop.f32.mrb[1].mxu0 }
 0x10d   : > { %v768_v8 = vpop.f32.mrb[2].mxu1  ;;  %v703_v9 = vpop.f32.mrb[2].mxu0 }
 0x10e   : > { %v771_v11 = vpack.c.bf16 %v766_v4, %v766_v4  ;;  %v2137_v12 = vpop.f32.mrb[3].mxu1  ;;  %v706_v13 = vmul.f32 0.35355338, %v701_v6  ;;  %v2129_v14 = vpop.f32.mrb[3].mxu0 }
 0x110   : > { %850 = vrot.lane.b32.xlu1 %v771_v11, %s2338_s20  ;;  %844 = vrot.lane.b32.xlu0 %v771_v11, %s2339_s27  ;;  %v707_v19 = vpack.c.bf16 %v706_v13, %v706_v13 }
 0x114   : > { %847 = vrot.lane.b32.xlu0 %v771_v11, %s2340_s21  ;;  %837 = vrot.lane.b32.xlu1 %v707_v19, %s2339_s27  ;;  %v829_v37 = vpop.f32.mrb[4].mxu0 }
 0x115   : > { %v2144_v38 = vpop.f32.mrb[5].mxu0  ;;  %v830_v42 = vadd.f32 %v2045_v41, %v829_v37 }
 0x116   : > { %v832_v39 = vpop.f32.mrb[6].mxu0 }
 0x117   : > { %v2145_v40 = vpop.f32.mrb[7].mxu0  ;;  %v835_v43 = vpack.c.bf16 %v830_v42, %v830_v42 }
 0x118   : > { %841 = vrot.lane.b32.xlu1 %v707_v19, %s2338_s20 }
 0x119   : > { %v1162_v44 = vsel %vm928_vm9, %v835_v43, 0 }
 0x132   : > { %860 = vxpose.xlu0.c.b16.start.end [1/1] (short) (narrow) %v771_v11, 16 }
 0x13b   : > { %839 = vrot.lane.b32.xlu0 %v707_v19, %s2340_s21 }
 0x182   : > { %v845_v22 = vpop.permute.xlu0 %844  ;;  %v851_v24 = vpop.permute.xlu1 %850 }
 0x183   : > { %876 = vxpose.xlu1.c.b16.start.end [1/1] (short) (narrow) %v845_v22, 16 }
 0x186   : > { %v848_v23 = vpop.permute.xlu0 %847  ;;  %v838_v27 = vpop.permute.xlu1 %837 }
 0x187   : > { %892 = vxpose.xlu0.c.b16.start.end [1/1] (short) (narrow) %v848_v23, 16 }
 0x18a   : > { %v842_v28 = vpop.permute.xlu1 %841 }
 0x18b   : > { %908 = vxpose.xlu0.c.b16.start.end [1/1] (short) (narrow) %v851_v24, 16 }
 0x198   : > { %v868_v25 = vpop.trf.xlu0 }
 0x199   : > { %v930_v26 = vsel %vm928_vm9, %v868_v25, 0 }
 0x19a   : > { %2147 = vmatpush3.bf16.msra.mxu1 %v930_v26 }
 0x19b   : > { %2158 = vmatprep.subr.bf16.mxu1 %v2335_v10 }
 0x19d   : > { %2149 = vmatmul.mubr.msk.bf16.vlgmr.msra.gmra.mrb[4].mxu1 %vm924_vm10, %v707_v19 }
 0x19e   : > { %2160 = vmatprep.mubr.msk.bf16.mxu1 %vm2336_vm0, %v2335_v10 }
 0x1ad   : > { %v840_v29 = vpop.permute.xlu0 %839 }
 0x1e9   : > { %v884_v30 = vpop.trf.xlu1 }
 0x1ea   : > { %v976_v32 = vsel %vm928_vm9, %v884_v30, 0 }
 0x1eb   : > { %2153 = vmatpush3.bf16.msra.mxu0 %v976_v32 }
 0x1ec   : > { %2164 = vmatprep.subr.bf16.mxu0 %v2335_v10 }
 0x1ed   : > { %v900_v33 = vpop.trf.xlu0 }
 0x1ee   : > { %v1022_v34 = vsel %vm928_vm9, %v900_v33, 0  ;;  %2155 = vmatmul.mubr.msk.bf16.vlgmr.msra.gmra.mrb[8].mxu0 %vm924_vm10, %v838_v27 }
 0x1ef   : > { %2159 = vmatpush3.bf16.msra.mxu1 %v1022_v34  ;;  %2166 = vmatprep.mubr.msk.bf16.mxu0 %vm2336_vm0, %v2335_v10 }
 0x1f0   : > { %2170 = vmatprep.subr.bf16.mxu1 %v2335_v10 }
 0x1f1   : > { %v916_v35 = vpop.trf.xlu0 }
 0x1f2   : > { %v1068_v36 = vsel %vm928_vm9, %v916_v35, 0  ;;  %2161 = vmatmul.mubr.msk.bf16.vlgmr.msra.gmra.mrb[8].mxu1 %vm924_vm10, %v840_v29 }
 0x1f3   : > { %2165 = vmatpush3.bf16.msra.mxu0 %v1068_v36  ;;  %2172 = vmatprep.mubr.msk.bf16.mxu1 %vm2336_vm0, %v2335_v10 }
 0x1f4   : > { %2176 = vmatprep.subr.bf16.mxu0 %v2335_v10  ;;  %2171 = vmatpush3.bf16.msra.mxu1 %v1162_v44 }
 0x1f5   : > { %2182 = vmatprep.subr.bf16.mxu1 %v2335_v10 }
 0x1f6   : > { %2167 = vmatmul.mubr.msk.bf16.vlgmr.msra.gmra.mrb[12].mxu0 %vm924_vm10, %v842_v28 }
 0x1f7   : > { %2178 = vmatprep.mubr.msk.bf16.mxu0 %vm2336_vm0, %v2335_v10 }
 0x270   : > { %v966_v45 = vpop.f32.mrb[4].mxu1 }
 0x271   : > { %v2150_v46 = vpop.f32.mrb[5].mxu1  ;;  %v1110_v47 = vsel %vm924_vm10, %v966_v45, -inf }
 0x272   : > { %1111 = vmax.xlane.f32.xlu1 %v1110_v47  ;;  %v969_v48 = vpop.f32.mrb[6].mxu1 }
 0x273   : > { %v2151_v49 = vpop.f32.mrb[7].mxu1 }
 0x2c1   : > { %v1012_v50 = vpop.f32.mrb[8].mxu0 }
 0x2c2   : > { %v2156_v51 = vpop.f32.mrb[9].mxu0  ;;  %v1113_v52 = vsel %vm924_vm10, %v1012_v50, -inf }
 0x2c3   : > { %1114 = vmax.xlane.f32.xlu0 %v1113_v52  ;;  %v1015_v53 = vpop.f32.mrb[10].mxu0 }
 0x2c4   : > { %v2157_v54 = vpop.f32.mrb[11].mxu0 }
 0x2c5   : > { %v1058_v55 = vpop.f32.mrb[8].mxu1 }
 0x2c6   : > { %v2162_v57 = vpop.f32.mrb[9].mxu1  ;;  %v1116_v58 = vsel %vm924_vm10, %v1058_v55, -inf }
 0x2c7   : > { %1117 = vmax.xlane.f32.xlu1 %v1116_v58  ;;  %v1061_v61 = vpop.f32.mrb[10].mxu1  ;;  %v1347_v57 = vld [vmem:[%s2747_s7 + $0x4] sm:$0xf] }
 0x2c8   : > { %v2163_v0 = vpop.f32.mrb[11].mxu1  ;;  %v1400_v58 = vsel %vm928_vm9, %v1347_v57, 0  ;;  %v1348_v61 = vld [vmem:[%s2747_s7 + $0x8] sm:$0xf] }
 0x2c9   : > { %v1104_v1 = vpop.f32.mrb[12].mxu0 }
 0x2ca   : > { %v2168_v2 = vpop.f32.mrb[13].mxu0  ;;  %v1119_v3 = vsel %vm924_vm10, %v1104_v1, -inf }
 0x2cb   : > { %1120 = vmax.xlane.f32.xlu0 %v1119_v3  ;;  %v1107_v4 = vpop.f32.mrb[14].mxu0  ;;  %v1446_v3 = vsel %vm928_vm9, %v1348_v61, 0 }
 0x2cc   : > { %v2169_v5 = vpop.f32.mrb[15].mxu0 }
 0x2d8   : > { %854 = vrot.lane.b32.xlu1 %v835_v43, %s2339_s27 }
 0x2ff   : > { %v1112_v6 = vpop.xlane.xlu1 %1111 }
 0x300   : > { %v1122_v7 = vsub.f32 %v966_v45, %v1112_v6  ;;  %v1349_v6 = vld [vmem:[%s2747_s7 + $0xc] sm:$0xf] }
 0x302   : > { %v1126_v8 = vmul.f32 1.442695, %v1122_v7 }
 0x304   : > { %2285 = vpow2.f32 %v1126_v8 }
 0x30e   : > { %v2286_v9 = vpop.eup %2285 }
 0x30f   : > { %v1134_v11 = vsel %vm924_vm10, %v2286_v9, 0.0 }
 0x310   : > { %1135 = vadd.xlane.f32.xlu1 %v1134_v11  ;;  %v1492_v11 = vsel %vm928_vm9, %v1349_v6, 0  ;;  %v2284_v6 = vld [vmem:[%s2753_s13 + $0x8] sm:$0xff]  }
 0x350   : > { %v1115_v12 = vpop.xlane.xlu0 %1114 }
 0x351   : > { %v1123_v13 = vsub.f32 %v1012_v50, %v1115_v12  ;;  %v1346_v50 = vld [vmem:[%s2747_s7] sm:$0xf] }
 0x352   : > { %v1354_v52 = vsel %vm928_vm9, %v1346_v50, 0 }
 0x353   : > { %v1128_v14 = vmul.f32 1.442695, %v1123_v13 }
 0x354   : > { %v1118_v19 = vpop.xlane.xlu1 %1117 }
 0x355   : > { %2287 = vpow2.f32 %v1128_v14  ;;  %v1124_v20 = vsub.f32 %v1058_v55, %v1118_v19 }
 0x357   : > { %v1130_v21 = vmul.f32 1.442695, %v1124_v20 }
 0x358   : > { %v855_v22 = vpop.permute.xlu1 %854  ;;  %v1121_v23 = vpop.xlane.xlu0 %1120 }
 0x359   : > { %2289 = vpow2.f32 %v1130_v21  ;;  %v1208_v24 = vsel %vm928_vm9, %v855_v22, 0  ;;  %v1125_v25 = vsub.f32 %v1104_v1, %v1121_v23 }
 0x35a   : > { %2177 = vmatpush3.bf16.msra.mxu0 %v1208_v24 }
 0x35b   : > { %v1132_v26 = vmul.f32 1.442695, %v1125_v25  ;;  %2188 = vmatprep.subr.bf16.mxu0 %v2335_v10 }
 0x35d   : > { %2291 = vpow2.f32 %v1132_v26 }
 0x35f   : > { %v2288_v27 = vpop.eup %2287 }
 0x360   : > { %v1137_v28 = vsel %vm924_vm10, %v2288_v27, 0.0 }
 0x361   : > { %1138 = vadd.xlane.f32.xlu0 %v1137_v28  ;;  %v2279_v28 = vld [vmem:[%s2749_s9] sm:$0xff]  }
 0x363   : > { %v2290_v29 = vpop.eup %2289 }
 0x364   : > { %v1140_v30 = vsel %vm924_vm10, %v2290_v29, 0.0 }
 0x365   : > { %1141 = vadd.xlane.f32.xlu1 %v1140_v30  ;;  %v2280_v30 = vld [vmem:[%s2751_s11] sm:$0xff]  }
 0x367   : > { %v2292_v32 = vpop.eup %2291 }
 0x368   : > { %v1143_v33 = vsel %vm924_vm10, %v2292_v32, 0.0 }
 0x369   : > { %1144 = vadd.xlane.f32.xlu0 %v1143_v33 }
 0x376   : > { %858 = vrot.lane.b32.xlu1 %v835_v43, %s2338_s20  ;;  %s1907_s20 = scalar_lea.vmem (%p2456_p5), %s2756_s16, %s2029_s24 }
 0x37f   : > { %856 = vrot.lane.b32.xlu0 %v835_v43, %s2340_s21 }
 0x39d   : > { %v1136_v34 = vpop.xlane.xlu1 %1135 }
 0x39e   : > { %2293 = vrcp.f32 %v1136_v34 }
 0x3a8   : > { %v2294_v35 = vpop.eup %2293 }
 0x3a9   : > { %v1150_v36 = vmul.f32 %v2294_v35, %v2286_v9 }
 0x3ab   : > { %v1154_v37 = vpack.c.bf16 %v1150_v36, %v1150_v36 }
 0x3ad   : > { %2173 = vmatmul.mubr.msk.bf16.vlgmr.msra.gmra.mrb[12].mxu1 %vm924_vm10, %v1154_v37 }
 0x3ae   : > { %2184 = vmatprep.mubr.msk.bf16.mxu1 %vm2336_vm0, %v2335_v10 }
 0x3ee   : > { %v1139_v38 = vpop.xlane.xlu0 %1138 }
 0x3ef   : > { %2295 = vrcp.f32 %v1139_v38 }
 0x3f2   : > { %v1142_v39 = vpop.xlane.xlu1 %1141 }
 0x3f3   : > { %2297 = vrcp.f32 %v1142_v39 }
 0x3f6   : > { %v1145_v40 = vpop.xlane.xlu0 %1144  ;;  %v859_v43 = vpop.permute.xlu1 %858 }
 0x3f7   : > { %2299 = vrcp.f32 %v1145_v40  ;;  %v1300_v49 = vsel %vm928_vm9, %v859_v43, 0 }
 0x3f9   : > { %v2296_v41 = vpop.eup %2295 }
 0x3fa   : > { %v1151_v42 = vmul.f32 %v2296_v41, %v2288_v27  ;;  %v857_v44 = vpop.permute.xlu0 %856 }
 0x3fb   : > { %v1254_v45 = vsel %vm928_vm9, %v857_v44, 0 }
 0x3fc   : > { %2183 = vmatpush3.bf16.msra.mxu1 %v1254_v45  ;;  %v1155_v46 = vpack.c.bf16 %v1151_v42, %v1151_v42 }
 0x3fd   : > { %v2298_v47 = vpop.eup %2297  ;;  %2194 = vmatprep.subr.bf16.mxu1 %v2335_v10 }
 0x3fe   : > { %v1152_v48 = vmul.f32 %v2298_v47, %v2290_v29  ;;  %2179 = vmatmul.mubr.msk.bf16.vlgmr.msra.gmra.mrb[16].mxu0 %vm924_vm10, %v1155_v46  ;;  %v2281_v29 = vld [vmem:[%s2749_s9 + $0x8] sm:$0xff]  }
 0x3ff   : > { %2189 = vmatpush3.bf16.msra.mxu0 %v1300_v49  ;;  %2190 = vmatprep.mubr.msk.bf16.mxu0 %vm2336_vm0, %v2335_v10 }
 0x400   : > { %v1156_v51 = vpack.c.bf16 %v1152_v48, %v1152_v48  ;;  %2200 = vmatprep.subr.bf16.mxu0 %v2335_v10 }
 0x401   : > { %v2300_v53 = vpop.eup %2299 }
 0x402   : > { %v1153_v54 = vmul.f32 %v2300_v53, %v2292_v32  ;;  %2185 = vmatmul.mubr.msk.bf16.vlgmr.msra.gmra.mrb[16].mxu1 %vm924_vm10, %v1156_v51  ;;  %v2282_v32 = vld [vmem:[%s2751_s11 + $0x8] sm:$0xff]   ;;  %v2061_v51 = vld [vmem:[%s2748_s8] ss:$0 sm:$0xff] }
 0x403   : > { %2195 = vmatpush3.bf16.msra.mxu1 %v1354_v52  ;;  %2196 = vmatprep.mubr.msk.bf16.mxu1 %vm2336_vm0, %v2335_v10 }
 0x404   : > { %v1157_v55 = vpack.c.bf16 %v1153_v54, %v1153_v54  ;;  %2206 = vmatprep.subr.bf16.mxu1 %v2335_v10 }
 0x406   : > { %2191 = vmatmul.mubr.msk.bf16.vlgmr.msra.gmra.mrb[20].mxu0 %vm924_vm10, %v1157_v55 }
 0x407   : > { %2202 = vmatprep.mubr.msk.bf16.mxu0 %vm2336_vm0, %v2335_v10  ;;  %2201 = vmatpush3.bf16.msra.mxu0 %v1400_v58 }
 0x408   : > { %2212 = vmatprep.subr.bf16.mxu0 %v2335_v10 }
 0x480   : > { %v1198_v0 = vpop.f32.mrb[12].mxu1 }
 0x481   : > { %v1342_v1 = vpack.c.bf16 %v1198_v0, %v1198_v0  ;;  %v2174_v2 = vpop.f32.mrb[13].mxu1 }
 0x482   : > { %v1201_v4 = vpop.f32.mrb[14].mxu1 }
 0x483   : > { %v2175_v5 = vpop.f32.mrb[15].mxu1  ;;  %2197 = vmatmul.mubr.msk.bf16.vlgmr.msra.gmra.mrb[20].mxu1 %vm924_vm10, %v1342_v1  ;;  %v1709_v4 = vcombine.low %v2491_v15, %v2493_v16  ;;  %v1756_v15 = vrot.slane %v1742_v63, %v2516_v56 }
 0x484   : > { %2207 = vmatpush3.bf16.msra.mxu1 %v1446_v3  ;;  %2208 = vmatprep.mubr.msk.bf16.mxu1 %vm2336_vm0, %v2335_v10  ;;  %v2283_v3 = vld [vmem:[%s2753_s13] sm:$0xff]   ;;  %v1726_v5 = vrot.slane %v1710_v31, %v2516_v56 }
 0x485   : > { %2218 = vmatprep.subr.bf16.mxu1 %v2335_v10 }
 0x4d1   : > { %v1244_v7 = vpop.f32.mrb[16].mxu0 }
 0x4d2   : > { %v1343_v8 = vpack.c.bf16 %v1244_v7, %v1244_v7  ;;  %v2180_v9 = vpop.f32.mrb[17].mxu0  ;;  %v1719_v7 = vrot.slane %v1709_v4, %v2516_v56 }
 0x4d3   : > { %v1247_v12 = vpop.f32.mrb[18].mxu0 }
 0x4d4   : > { %v2181_v13 = vpop.f32.mrb[19].mxu0  ;;  %2203 = vmatmul.mubr.msk.bf16.vlgmr.msra.gmra.mrb[24].mxu0 %vm924_vm10, %v1343_v8  ;;  %v1741_v8 = vcombine.low %v1719_v7, %v1726_v5 }
 0x4d5   : > { %v1290_v14 = vpop.f32.mrb[16].mxu1  ;;  %2213 = vmatpush3.bf16.msra.mxu0 %v1492_v11  ;;  %2214 = vmatprep.mubr.msk.bf16.mxu0 %vm2336_vm0, %v2335_v10 }
 0x4d6   : > { %v1344_v19 = vpack.c.bf16 %v1290_v14, %v1290_v14  ;;  %v2186_v20 = vpop.f32.mrb[17].mxu1  ;;  %2226 = vmatprep.subr.bf16.mxu0 %v2335_v10  ;;  %v1749_v16 = vrot.slane %v1741_v8, %v2516_v56 }
 0x4d7   : > { %v1293_v21 = vpop.f32.mrb[18].mxu1 }
 0x4d8   : > { %v2187_v22 = vpop.f32.mrb[19].mxu1  ;;  %2209 = vmatmul.mubr.msk.bf16.vlgmr.msra.gmra.mrb[24].mxu1 %vm924_vm10, %v1344_v19  ;;  %v1757_v17 = vcombine.low %v1749_v16, %v1756_v15 }
 0x4d9   : > { %v1336_v23 = vpop.f32.mrb[20].mxu0  ;;  %2222 = vmatprep.mubr.msk.bf16.mxu1 %vm2336_vm0, %v2335_v10  ;;  %2219 = vmatpush3.bf16.msra.mxu1 %v2279_v28 }
 0x4da   : > { %v1345_v24 = vpack.c.bf16 %v1336_v23, %v1336_v23  ;;  %v2192_v25 = vpop.f32.mrb[21].mxu0  ;;  %2220 = vmatprep.subr.bf16.mxu1 %v2335_v10 }
 0x4db   : > { %v1339_v26 = vpop.f32.mrb[22].mxu0 }
 0x4dc   : > { %v2193_v27 = vpop.f32.mrb[23].mxu0  ;;  %2215 = vmatmul.mubr.msk.bf16.vlgmr.msra.gmra.mrb[28].mxu0 %vm924_vm10, %v1345_v24 }
 0x4dd   : > { %2230 = vmatprep.mubr.msk.bf16.mxu0 %vm2336_vm0, %v2335_v10  ;;  %2221 = vmatpush3.bf16.msra.mxu1 %v2281_v29 }
 0x4de   : > { %2227 = vmatpush3.bf16.msra.mxu0 %v2280_v30  ;;  %2234 = vmatprep.subr.bf16.mxu1 %v2335_v10 }
 0x4df   : > { %2228 = vmatprep.subr.bf16.mxu0 %v2335_v10 }
 0x4e0   : > { %2223 = vmatmul.mubr.msk.bf16.vlgmr.msra.gmra.mrb[28].mxu1 %vm662_vm8, %v2527_v62 }
 0x4e1   : > { %2238 = vmatprep.mubr.msk.bf16.mxu1 %vm2336_vm0, %v2335_v10  ;;  %2235 = vmatpush3.bf16.msra.mxu1 %v2283_v3 }
 0x4e2   : > { %2229 = vmatpush3.bf16.msra.mxu0 %v2282_v32  ;;  %2236 = vmatprep.subr.bf16.mxu1 %v2335_v10  ;;  %v2069_v10 = vld [vmem:[%s2752_s12] ss:$0 sm:$0xff] }
 0x4e5   : > { %2237 = vmatpush3.bf16.msra.mxu1 %v2284_v6 }
 0x556   : > { %v1390_v33 = vpop.f32.mrb[20].mxu1 }
 0x557   : > { %v2198_v34 = vpop.f32.mrb[21].mxu1  ;;  %v1534_v38 = vsel %vm662_vm8, %v1390_v33, 0.0  ;;  %v2073_v33 = vld [vmem:[%s2754_s14] ss:$0 sm:$0xff] }
 0x558   : > { %v1393_v35 = vpop.f32.mrb[22].mxu1 }
 0x559   : > { %v2199_v36 = vpop.f32.mrb[23].mxu1 }
 0x5a7   : > { %v1436_v37 = vpop.f32.mrb[24].mxu0 }
 0x5a8   : > { %v1535_v39 = vsel %vm662_vm8, %v1436_v37, 0.0  ;;  %v2204_v40 = vpop.f32.mrb[25].mxu0 }
 0x5a9   : > { %v1536_v41 = vadd.f32 %v1535_v39, %v1534_v38  ;;  %v1439_v42 = vpop.f32.mrb[26].mxu0 }
 0x5aa   : > { %v2205_v44 = vpop.f32.mrb[27].mxu0 }
 0x5ab   : > { %v1482_v43 = vpop.f32.mrb[24].mxu1 }
 0x5ac   : > { %v1537_v62 = vsel %vm662_vm8, %v1482_v43, 0.0  ;;  %v2210_v45 = vpop.f32.mrb[25].mxu1 }
 0x5ad   : > { %v1538_v46 = vadd.f32 %v1537_v62, %v1536_v41  ;;  %v1485_v47 = vpop.f32.mrb[26].mxu1 }
 0x5ae   : > { %v2211_v48 = vpop.f32.mrb[27].mxu1 }
 0x5af   : > { %v1528_v49 = vpop.f32.mrb[28].mxu0 }
 0x5b0   : > { %v1539_v50 = vsel %vm662_vm8, %v1528_v49, 0.0  ;;  %v2216_v52 = vpop.f32.mrb[29].mxu0 }
 0x5b1   : > { %v1540_v53 = vadd.f32 %v1539_v50, %v1538_v46  ;;  %v1531_v54 = vpop.f32.mrb[30].mxu0 }
 0x5b2   : > { %v2217_v55 = vpop.f32.mrb[31].mxu0 }
 0x5b3   : > { %v1548_v57 = vadd.f32 %v2061_v51, %v1540_v53  ;;  %v1607_v61 = vpop.f32.mrb[28].mxu1 }
 0x5b4   : > { %v2224_v0 = vpop.f32.mrb[29].mxu1  ;;  %v1608_v31 = vadd.f32 %v2062_v18, %v1607_v61 }
 0x5b5   : > { %v1549_v58 = vpack.c.bf16 %v1548_v57, %v1548_v57  ;;  %v1610_v1 = vpop.f32.mrb[30].mxu1 }
 0x5b6   : > { %v2225_v2 = vpop.f32.mrb[31].mxu1 }
 0x5b7   : > { %2231 = vmatmul.mubr.msk.bf16.vlgmr.msra.gmra.mrb[32].mxu0 %vm662_vm8, %v1549_v58 }
 0x68a   : > { %v1666_v9 = vpop.f32.mrb[32].mxu0 }
 0x68b   : > { %v1672_v11 = vadd.f32 %v1666_v9, %v1608_v31  ;;  %v2232_v12 = vpop.f32.mrb[33].mxu0 }
 0x68c   : > { %v1669_v60 = vpop.f32.mrb[34].mxu0 }
 0x68d   : > { %v1680_v63 = vadd.f32 %v2069_v10, %v1672_v11  ;;  %v2233_v13 = vpop.f32.mrb[35].mxu0 }
 0x68f   : > { %v2070_v14 = vmul.f32 -1.442695, %v1680_v63  ;;  %v1694_v19 = vsub.f32 %v1680_v63, %v2071_v59 }
 0x691   : > { %2301 = vpow2.f32 %v2070_v14  ;;  %v2072_v20 = vmul.f32 -1.442695, %v1694_v19 }
 0x693   : > { %2303 = vpow2.f32 %v2072_v20 }
 0x69b   : > { %v2302_v21 = vpop.eup %2301 }
 0x69c   : > { %v1684_v22 = vadd.f32 1.0, %v2302_v21 }
 0x69d   : > { %v2304_v23 = vpop.eup %2303 }
 0x69e   : > { %2305 = vrcp.f32 %v1684_v22  ;;  %v1698_v24 = vadd.f32 1.0, %v2304_v23 }
 0x6a0   : > { %2307 = vrcp.f32 %v1698_v24 }
 0x6a8   : > { %v2306_v25 = vpop.eup %2305 }
 0x6a9   : > { %v1759_v26 = vmul.f32 %v2306_v25, %v1757_v17 }
 0x6aa   : > { %v2308_v27 = vpop.eup %2307 }
 0x6ab   : > { %v1760_v28 = vadd.f32 %v1759_v26, %v1548_v57  ;;  %v1829_v29 = vsub.f32 1.0, %v2308_v27 }
 0x6ad   : > { %v1761_v30 = vpack.c.bf16 %v1760_v28, %v1760_v28  ;;  %v1830_v32 = vmul.f32 %v1829_v29, %v1757_v17 }
 0x6af   : > { %2239 = vmatmul.mubr.msk.bf16.vlgmr.msra.gmra.mrb[32].mxu1 %vm662_vm8, %v1761_v30 }
 0x782   : > { %v1822_v34 = vpop.f32.mrb[32].mxu1 }
 0x783   : > { %v1823_v35 = vadd.f32 %v2073_v33, %v1822_v34  ;;  %v2240_v36 = vpop.f32.mrb[33].mxu1 }
 0x784   : > { %v1825_v37 = vpop.f32.mrb[34].mxu1 }
 0x785   : > { %2309 = vtanh.f32 %v1823_v35  ;;  %v2241_v38 = vpop.f32.mrb[35].mxu1 }
 0x78f   : > { %v2310_v39 = vpop.eup %2309 }
 0x790   : > { %v1831_v40 = vmul.f32 %v2310_v39, %v2308_v27 }
 0x792   : > { %v1832_v41 = vadd.f32 %v1831_v40, %v1830_v32 }
 0x794   : > { %v1834_v42 = vcombine.high %v1832_v41, %v1832_v41  ;;  %v1841_v44 = vrot.slane %v1832_v41, %v2516_v56 }
 0x796   : > { %v1848_v43 = vrot.slane %v1834_v42, %v2516_v56  ;;  %v1849_v62 = vcombine.high %v1841_v44, %v1841_v44  ;;  %v1857_v45 = vrot.slane %v1841_v44, %v2516_v56 }
 0x798   : > { %v1850_v46 = vcombine.high %v1848_v43, %v1848_v43  ;;  %v1864_v47 = vrot.slane %v1848_v43, %v2516_v56  ;;  %v1871_v48 = vrot.slane %v1849_v62, %v2516_v56  ;;  %v1879_v49 = vcombine.high %v1857_v45, %v1857_v45  ;;  %1892 = vst.msk [vmem:[%s583_s19] sm:$0x1] %vm1891_vm11, %v1857_v45  ;;  %1906 = sbr.rel (!%p2456_p5) target bundleno = 1959 (0x7a7), region = 129 }
 0x79a   : > { %v1878_v50 = vrot.slane %v1850_v46, %v2516_v56  ;;  %v1880_v51 = vcombine.high %v1864_v47, %v1864_v47  ;;  %v1881_v52 = vcombine.high %v1871_v48, %v1871_v48  ;;  %1893 = vst.msk [vmem:[%s583_s19 + $0x1] sm:$0x1] %vm1891_vm11, %v1871_v48  ;;  %1894 = vst.msk [vmem:[%s583_s19 + $0x2] sm:$0x1] %vm1891_vm11, %v1879_v49 }
 0x79b   : > { %1896 = vst.msk [vmem:[%s583_s19 + $0x4] sm:$0x1] %vm1891_vm11, %v1864_v47 }
 0x79c   : > { %v1882_v53 = vcombine.high %v1878_v50, %v1878_v50  ;;  %1895 = vst.msk [vmem:[%s583_s19 + $0x3] sm:$0x1] %vm1891_vm11, %v1881_v52  ;;  %1897 = vst.msk [vmem:[%s583_s19 + $0x5] sm:$0x1] %vm1891_vm11, %v1878_v50 }
 0x79d   : > { %1898 = vst.msk [vmem:[%s583_s19 + $0x6] sm:$0x1] %vm1891_vm11, %v1880_v51 }
 0x79e   : > { %1899 = vst.msk [vmem:[%s583_s19 + $0x7] sm:$0x1] %vm1891_vm11, %v1882_v53 }
 0x79f   : > { %v1923_v56 = vld [vmem:[%s583_s19] sm:$0x1] }
 0x7a0   : > { %1924 = vst [vmem:[%s1907_s20] sm:$0x1] %v1923_v56 }
 0x7a1   : > { %v1925_v54 = vld [vmem:[%s583_s19 + $0x1] sm:$0x1]  ;;  %v1927_v55 = vld [vmem:[%s583_s19 + $0x2] sm:$0x1] }
 0x7a2   : > { %1926 = vst [vmem:[%s1907_s20 + $0x2] sm:$0x1] %v1925_v54  ;;  %1928 = vst [vmem:[%s1907_s20 + $0x4] sm:$0x1] %v1927_v55  ;;  %v1931_v58 = vld [vmem:[%s583_s19 + $0x4] sm:$0x1] }
 0x7a3   : > { %v1929_v57 = vld [vmem:[%s583_s19 + $0x3] sm:$0x1]  ;;  %v1933_v61 = vld [vmem:[%s583_s19 + $0x5] sm:$0x1]  ;;  %1932 = vst [vmem:[%s1907_s20 + $0x8] sm:$0x1] %v1931_v58 }
 0x7a4   : > { %1930 = vst [vmem:[%s1907_s20 + $0x6] sm:$0x1] %v1929_v57  ;;  %1934 = vst [vmem:[%s1907_s20 + $0xa] sm:$0x1] %v1933_v61  ;;  %v1935_v0 = vld [vmem:[%s583_s19 + $0x6] sm:$0x1] }
 0x7a5   : > { %v1937_v1 = vld [vmem:[%s583_s19 + $0x7] sm:$0x1]  ;;  %1936 = vst [vmem:[%s1907_s20 + $0xc] sm:$0x1] %v1935_v0 }
 0x7a6   : > { %1938 = vst [vmem:[%s1907_s20 + $0xe] sm:$0x1] %v1937_v1 }
 0x7a7 PF: > { %p23_p10 = scmp.ge.s32.totalorder %s2443_s25, 4   ;;  %s2760_s21 = smov %s2329_s22 }
 0x7a8   : > { %s2761_s22 = smov %s2454_s28  ;;  %s2762_s23 = smov %s2443_s25 }
 0x7a9   :  { %25 = sbr.rel (!%p23_p10) target bundleno = 4 (0x4), region = 201 }

</bundles_post_ra>
